<compile_context>
chip_gen: v6e
topology: v6e:2x2x1
jax: 0.10.0
libtpu: 0.0.40
codegen_flags: <defaults>
</compile_context>

<pallas_src>
import jax
import jax.numpy as jnp
from jax.experimental import pallas as pl
from jax.experimental.pallas import tpu as pltpu

NCLS = 10
NCLS_PAD = 128                      # lane-dense padded logits width
NEG_BIG = -1e30                     # bias padding for fake logit lanes
HIDDEN_PAD = [512, 256, 128, 128, NCLS_PAD]   # padded out-width per layer


def _round_up(x, m):
    return ((x + m - 1) // m) * m


def mlp_kernel(x_ref,
               w1_ref, b1_ref,
               w2_ref, b2_ref,
               w3_ref, b3_ref,
               w4_ref, b4_ref,
               w5_ref, b5_ref,
               o_ref):
    # Load weights/biases once; they are shared by both row halves.
    ws = [w1_ref[...], w2_ref[...], w3_ref[...], w4_ref[...], w5_ref[...]]
    bs = [b1_ref[...], b2_ref[...], b3_ref[...], b4_ref[...], b5_ref[...]]

    def hidden_layer(h, li):
        h = jnp.dot(h, ws[li], preferred_element_type=jnp.float32) + bs[li]
        return jnp.maximum(h, 0.0).astype(jnp.bfloat16)   # ReLU (Dropout -> identity)

    def logits_and_logsoftmax(h):
        # Padded logit lanes carry -1e30 bias -> exp underflows to 0 in the sum.
        logits = jnp.dot(h, ws[4], preferred_element_type=jnp.float32) + bs[4]
        m = jnp.max(logits, axis=-1, keepdims=True)
        shifted = logits - m
        lse = jnp.log(jnp.sum(jnp.exp(shifted), axis=-1, keepdims=True))
        return shifted - lse

    tm = x_ref.shape[0]
    if tm >= 16 and tm % 16 == 0:
        # Two independent row halves -> MXU work of one half overlaps the
        # elementwise / softmax tail of the other (scheduler co-issues them).
        half = tm // 2
        ha = x_ref[:half, :].astype(jnp.bfloat16)
        hb = x_ref[half:, :].astype(jnp.bfloat16)
        for li in range(4):
            ha = hidden_layer(ha, li)
            hb = hidden_layer(hb, li)
        o_ref[:half, :] = logits_and_logsoftmax(ha)
        o_ref[half:, :] = logits_and_logsoftmax(hb)
    else:
        h = x_ref[...].astype(jnp.bfloat16)
        for li in range(4):
            h = hidden_layer(h, li)
        o_ref[...] = logits_and_logsoftmax(h)


def pack_params(params):
    """Cast weights to bf16, keep biases f32, zero-pad all layer widths to
    lane-dense multiples of 128.  Hidden-layer padded biases are 0 (so ReLU
    keeps the fake lanes exactly 0); the final layer's padded biases are -1e30
    (so the fake logits vanish in the softmax sum)."""
    packed = []
    in_pad = params[0][0].shape[0]            # 784 (first layer's K, unpadded)
    n = len(params)
    for i, (w, b) in enumerate(params):
        out_pad = HIDDEN_PAD[i]
        wq = jnp.pad(w.astype(jnp.bfloat16),
                     ((0, in_pad - w.shape[0]), (0, out_pad - w.shape[1])))
        if i == n - 1:
            bq = jnp.pad(b.astype(jnp.float32),
                         ((0, 0), (0, out_pad - b.shape[1])),
                         constant_values=NEG_BIG)
        else:
            bq = jnp.pad(b.astype(jnp.float32),
                         ((0, 0), (0, out_pad - b.shape[1])))
        packed.append((wq, bq))
        in_pad = out_pad
    return packed


def mlp_forward(x, params, *, tm=512):
    """x: (B, 784) f32 or bf16. params: list of (W(in,out) f32, b(1,out) f32).

    tm: max batch tile.  Default 512; the wrapper shrinks it so there are at
    least two grid steps whenever the padded batch allows (keeps both v7x
    TensorCores busy) and keeps tiles 16-row aligned for the in-kernel
    two-half split.
    """
    B, D = x.shape
    packed = pack_params(params)

    bp = _round_up(B, 8)
    if bp <= 2 * tm:
        # At least 2 tiles when possible (v7x has 2 TensorCores).
        tm_eff = min(tm, _round_up(pl.cdiv(bp, 2), 8))
    else:
        tm_eff = tm
    if tm_eff >= 16:
        tm_eff = _round_up(tm_eff, 16)   # keep the in-kernel half-split 8-row aligned
    tm_eff = max(tm_eff, 8)
    bp = _round_up(bp, tm_eff)
    if bp != B:
        x = jnp.pad(x, ((0, bp - B), (0, 0)))

    flat = [x]
    in_specs = [pl.BlockSpec((tm_eff, D), lambda i: (i, 0))]
    for (w, b) in packed:
        flat += [w, b]
        # Constant block index -> weights/biases stay resident in VMEM.
        in_specs += [pl.BlockSpec(w.shape, lambda i: (0, 0)),
                     pl.BlockSpec(b.shape, lambda i: (0, 0))]

    out = pl.pallas_call(
        mlp_kernel,
        out_shape=jax.ShapeDtypeStruct((bp, NCLS_PAD), jnp.float32),
        grid=(bp // tm_eff,),
        in_specs=in_specs,
        out_specs=pl.BlockSpec((tm_eff, NCLS_PAD), lambda i: (i, 0)),
        compiler_params=pltpu.CompilerParams(
            dimension_semantics=("parallel",),   # shard batch tiles across TCs (v7x)
            vmem_limit_bytes=32 << 20,
        ),
    )(*flat)
    return out[:B, :NCLS]


def init_params(key):
    """Deterministic init mimicking PyTorch nn.Linear default:
    U(-1/sqrt(fan_in), 1/sqrt(fan_in)) for both weight and bias.
    Weights stored (in_features, out_features) so the kernel computes h @ W + b."""
    dims = [(784, 392), (392, 196), (196, 98), (98, 49), (49, 10)]
    params = []
    for (fan_in, fan_out) in dims:
        key, kw, kb = jax.random.split(key, 3)
        bound = 1.0 / jnp.sqrt(fan_in)
        w = jax.random.uniform(kw, (fan_in, fan_out), jnp.float32, -bound, bound)
        b = jax.random.uniform(kb, (1, fan_out), jnp.float32, -bound, bound)
        params.append((w, b))
    return params


def reference_forward(x, params):
    """Pure-JAX reference using the same bf16-weight / f32-accumulate recipe."""
    h = x
    n = len(params)
    for i, (w, b) in enumerate(params):
        h = jnp.dot(h.astype(jnp.bfloat16), w.astype(jnp.bfloat16),
                    preferred_element_type=jnp.float32) + b
        if i < n - 1:
            h = jnp.maximum(h, 0.0)
    return jax.nn.log_softmax(h, axis=1)


if __name__ == "__main__":
    key = jax.random.PRNGKey(0)
    key, kx1, kx2 = jax.random.split(key, 3)
    params = init_params(key)

    # Small batch (single 8-row grid step, no half-split path).
    B1 = 8
    x1 = jax.random.normal(kx1, (B1, 784), dtype=jnp.float32)
    out1 = jax.block_until_ready(mlp_forward(x1, params))
    ref1 = reference_forward(x1, params)
    assert out1.shape == (B1, NCLS), out1.shape
    assert jnp.allclose(out1, ref1, atol=5e-3, rtol=5e-3), \
        f"max abs err {jnp.max(jnp.abs(out1 - ref1))}"

    # Larger batch: exercises batch padding, the >=2-tile grid (both v7x TCs)
    # and the in-kernel two-half interleave.
    B2 = 300
    x2 = jax.random.normal(kx2, (B2, 784), dtype=jnp.float32)
    out2 = jax.block_until_ready(mlp_forward(x2, params))
    ref2 = reference_forward(x2, params)
    assert out2.shape == (B2, NCLS), out2.shape
    assert jnp.allclose(out2, ref2, atol=5e-3, rtol=5e-3), \
        f"max abs err {jnp.max(jnp.abs(out2 - ref2))}"

    # bf16 input path (halves the HBM-bound x stream on v5e/v6e); numerics are
    # identical to the f32 path because the kernel casts x to bf16 anyway.
    out3 = jax.block_until_ready(mlp_forward(x2.astype(jnp.bfloat16), params))
    assert out3.shape == (B2, NCLS), out3.shape
    assert jnp.allclose(out3, ref2, atol=5e-3, rtol=5e-3), \
        f"max abs err {jnp.max(jnp.abs(out3 - ref2))}"

    print("KERNEL_OK")
</pallas_src>

<mosaic_0001>
module attributes {stable_mosaic.version = 11 : i64} {
  func.func @mlp_kernel(%arg0: i32, %arg1: memref<8x784xf32, #tpu.memory_space<vmem>>, %arg2: memref<784x512xbf16, #tpu.memory_space<vmem>>, %arg3: memref<1x512xf32, #tpu.memory_space<vmem>>, %arg4: memref<512x256xbf16, #tpu.memory_space<vmem>>, %arg5: memref<1x256xf32, #tpu.memory_space<vmem>>, %arg6: memref<256x128xbf16, #tpu.memory_space<vmem>>, %arg7: memref<1x128xf32, #tpu.memory_space<vmem>>, %arg8: memref<128x128xbf16, #tpu.memory_space<vmem>>, %arg9: memref<1x128xf32, #tpu.memory_space<vmem>>, %arg10: memref<128x128xbf16, #tpu.memory_space<vmem>>, %arg11: memref<1x128xf32, #tpu.memory_space<vmem>>, %arg12: memref<8x128xf32, #tpu.memory_space<vmem>>) attributes {dimension_semantics = [#tpu.dimension_semantics<parallel>], iteration_bounds = array<i64: 1>, scalar_prefetch = 0 : i64, scratch_operands = 0 : i64, tpu.core_type = #tpu.core_type<tc>, window_params = [{transform_indices = @transform_0, window_bounds = array<i64: 8, 784>}, {pipeline_mode = #tpu.pipeline_mode<synchronous>, transform_indices = @transform_1, window_bounds = array<i64: 784, 512>}, {pipeline_mode = #tpu.pipeline_mode<synchronous>, transform_indices = @transform_2, window_bounds = array<i64: 1, 512>}, {pipeline_mode = #tpu.pipeline_mode<synchronous>, transform_indices = @transform_3, window_bounds = array<i64: 512, 256>}, {pipeline_mode = #tpu.pipeline_mode<synchronous>, transform_indices = @transform_4, window_bounds = array<i64: 1, 256>}, {pipeline_mode = #tpu.pipeline_mode<synchronous>, transform_indices = @transform_5, window_bounds = array<i64: 256, 128>}, {pipeline_mode = #tpu.pipeline_mode<synchronous>, transform_indices = @transform_6, window_bounds = array<i64: 1, 128>}, {pipeline_mode = #tpu.pipeline_mode<synchronous>, transform_indices = @transform_7, window_bounds = array<i64: 128, 128>}, {pipeline_mode = #tpu.pipeline_mode<synchronous>, transform_indices = @transform_8, window_bounds = array<i64: 1, 128>}, {pipeline_mode = #tpu.pipeline_mode<synchronous>, transform_indices = @transform_9, window_bounds = array<i64: 128, 128>}, {pipeline_mode = #tpu.pipeline_mode<synchronous>, transform_indices = @transform_10, window_bounds = array<i64: 1, 128>}, {transform_indices = @transform_11, window_bounds = array<i64: 8, 128>}]} {
    %c0 = arith.constant 0 : index
    %c0_0 = arith.constant 0 : index
    %0 = vector.load %arg2[%c0, %c0_0] : memref<784x512xbf16, #tpu.memory_space<vmem>>, vector<784x512xbf16>
    %c0_1 = arith.constant 0 : index
    %c0_2 = arith.constant 0 : index
    %1 = vector.load %arg4[%c0_1, %c0_2] : memref<512x256xbf16, #tpu.memory_space<vmem>>, vector<512x256xbf16>
    %c0_3 = arith.constant 0 : index
    %c0_4 = arith.constant 0 : index
    %2 = vector.load %arg6[%c0_3, %c0_4] : memref<256x128xbf16, #tpu.memory_space<vmem>>, vector<256x128xbf16>
    %c0_5 = arith.constant 0 : index
    %c0_6 = arith.constant 0 : index
    %3 = vector.load %arg8[%c0_5, %c0_6] : memref<128x128xbf16, #tpu.memory_space<vmem>>, vector<128x128xbf16>
    %c0_7 = arith.constant 0 : index
    %c0_8 = arith.constant 0 : index
    %4 = vector.load %arg10[%c0_7, %c0_8] : memref<128x128xbf16, #tpu.memory_space<vmem>>, vector<128x128xbf16>
    %c0_9 = arith.constant 0 : index
    %c0_10 = arith.constant 0 : index
    %5 = vector.load %arg3[%c0_9, %c0_10] : memref<1x512xf32, #tpu.memory_space<vmem>>, vector<1x512xf32>
    %c0_11 = arith.constant 0 : index
    %c0_12 = arith.constant 0 : index
    %6 = vector.load %arg5[%c0_11, %c0_12] : memref<1x256xf32, #tpu.memory_space<vmem>>, vector<1x256xf32>
    %c0_13 = arith.constant 0 : index
    %c0_14 = arith.constant 0 : index
    %7 = vector.load %arg7[%c0_13, %c0_14] : memref<1x128xf32, #tpu.memory_space<vmem>>, vector<1x128xf32>
    %c0_15 = arith.constant 0 : index
    %c0_16 = arith.constant 0 : index
    %8 = vector.load %arg9[%c0_15, %c0_16] : memref<1x128xf32, #tpu.memory_space<vmem>>, vector<1x128xf32>
    %c0_17 = arith.constant 0 : index
    %c0_18 = arith.constant 0 : index
    %9 = vector.load %arg11[%c0_17, %c0_18] : memref<1x128xf32, #tpu.memory_space<vmem>>, vector<1x128xf32>
    %c0_19 = arith.constant 0 : index
    %c0_20 = arith.constant 0 : index
    %10 = vector.load %arg1[%c0_19, %c0_20] : memref<8x784xf32, #tpu.memory_space<vmem>>, vector<8x784xf32>
    %11 = arith.truncf %10 : vector<8x784xf32> to vector<8x784xbf16>
    %cst = arith.constant dense<0.000000e+00> : vector<8x512xf32>
    %12 = tpu.matmul %11, %0, %cst {dimension_numbers = #tpu.dot_dimension_numbers<[1], [0], [0], [1], [0, 0, 1, 1], [], []>} : vector<8x784xbf16>, vector<784x512xbf16>, vector<8x512xf32> -> vector<8x512xf32>
    %13 = vector.broadcast %5 : vector<1x512xf32> to vector<8x512xf32>
    %14 = arith.addf %12, %13 : vector<8x512xf32>
    %cst_21 = arith.constant 0.000000e+00 : f32
    %15 = vector.broadcast %cst_21 : f32 to vector<8x512xf32>
    %16 = arith.maximumf %14, %15 : vector<8x512xf32>
    %17 = arith.truncf %16 : vector<8x512xf32> to vector<8x512xbf16>
    %cst_22 = arith.constant dense<0.000000e+00> : vector<8x256xf32>
    %18 = tpu.matmul %17, %1, %cst_22 {dimension_numbers = #tpu.dot_dimension_numbers<[1], [0], [0], [1], [0, 0, 1, 1], [], []>} : vector<8x512xbf16>, vector<512x256xbf16>, vector<8x256xf32> -> vector<8x256xf32>
    %19 = vector.broadcast %6 : vector<1x256xf32> to vector<8x256xf32>
    %20 = arith.addf %18, %19 : vector<8x256xf32>
    %cst_23 = arith.constant 0.000000e+00 : f32
    %21 = vector.broadcast %cst_23 : f32 to vector<8x256xf32>
    %22 = arith.maximumf %20, %21 : vector<8x256xf32>
    %23 = arith.truncf %22 : vector<8x256xf32> to vector<8x256xbf16>
    %cst_24 = arith.constant dense<0.000000e+00> : vector<8x128xf32>
    %24 = tpu.matmul %23, %2, %cst_24 {dimension_numbers = #tpu.dot_dimension_numbers<[1], [0], [0], [1], [0, 0, 1, 1], [], []>} : vector<8x256xbf16>, vector<256x128xbf16>, vector<8x128xf32> -> vector<8x128xf32>
    %25 = vector.broadcast %7 : vector<1x128xf32> to vector<8x128xf32>
    %26 = arith.addf %24, %25 : vector<8x128xf32>
    %cst_25 = arith.constant 0.000000e+00 : f32
    %27 = vector.broadcast %cst_25 : f32 to vector<8x128xf32>
    %28 = arith.maximumf %26, %27 : vector<8x128xf32>
    %29 = arith.truncf %28 : vector<8x128xf32> to vector<8x128xbf16>
    %cst_26 = arith.constant dense<0.000000e+00> : vector<8x128xf32>
    %30 = tpu.matmul %29, %3, %cst_26 {dimension_numbers = #tpu.dot_dimension_numbers<[1], [0], [0], [1], [0, 0, 1, 1], [], []>} : vector<8x128xbf16>, vector<128x128xbf16>, vector<8x128xf32> -> vector<8x128xf32>
    %31 = vector.broadcast %8 : vector<1x128xf32> to vector<8x128xf32>
    %32 = arith.addf %30, %31 : vector<8x128xf32>
    %cst_27 = arith.constant 0.000000e+00 : f32
    %33 = vector.broadcast %cst_27 : f32 to vector<8x128xf32>
    %34 = arith.maximumf %32, %33 : vector<8x128xf32>
    %35 = arith.truncf %34 : vector<8x128xf32> to vector<8x128xbf16>
    %cst_28 = arith.constant dense<0.000000e+00> : vector<8x128xf32>
    %36 = tpu.matmul %35, %4, %cst_28 {dimension_numbers = #tpu.dot_dimension_numbers<[1], [0], [0], [1], [0, 0, 1, 1], [], []>} : vector<8x128xbf16>, vector<128x128xbf16>, vector<8x128xf32> -> vector<8x128xf32>
    %37 = vector.broadcast %9 : vector<1x128xf32> to vector<8x128xf32>
    %38 = arith.addf %36, %37 : vector<8x128xf32>
    %cst_29 = arith.constant dense<0xFF800000> : vector<8xf32>
    %39 = vector.multi_reduction <maximumf>, %38, %cst_29 [1] : vector<8x128xf32> to vector<8xf32>
    %40 = vector.shape_cast %39 : vector<8xf32> to vector<8x1xf32>
    %41 = vector.broadcast %40 : vector<8x1xf32> to vector<8x128xf32>
    %42 = arith.subf %38, %41 : vector<8x128xf32>
    %43 = math.exp %42 : vector<8x128xf32>
    %cst_30 = arith.constant dense<0.000000e+00> : vector<8xf32>
    %44 = vector.multi_reduction <add>, %43, %cst_30 [1] : vector<8x128xf32> to vector<8xf32>
    %45 = vector.shape_cast %44 : vector<8xf32> to vector<8x1xf32>
    %46 = math.log %45 : vector<8x1xf32>
    %47 = vector.broadcast %46 : vector<8x1xf32> to vector<8x128xf32>
    %48 = arith.subf %42, %47 : vector<8x128xf32>
    %c0_31 = arith.constant 0 : index
    %c0_32 = arith.constant 0 : index
    %49 = vector.load %arg12[%c0_31, %c0_32] : memref<8x128xf32, #tpu.memory_space<vmem>>, vector<8x128xf32>
    tpu.vector_store %arg12[%c0_31, %c0_32], %48 {strides = array<i32>} : memref<8x128xf32, #tpu.memory_space<vmem>>, vector<8x128xf32>,
    return
  }
  func.func @transform_0(%arg0: i32) -> (i32, i32) {
    %c0_i32 = arith.constant 0 : i32
    %c0_i32_0 = arith.constant 0 : i32
    return %arg0, %c0_i32 : i32, i32
  }
  func.func @transform_1(%arg0: i32) -> (i32, i32) {
    %c0_i32 = arith.constant 0 : i32
    %c0_i32_0 = arith.constant 0 : i32
    %c0_i32_1 = arith.constant 0 : i32
    return %c0_i32, %c0_i32_0 : i32, i32
  }
  func.func @transform_2(%arg0: i32) -> (i32, i32) {
    %c0_i32 = arith.constant 0 : i32
    %c0_i32_0 = arith.constant 0 : i32
    %c0_i32_1 = arith.constant 0 : i32
    return %c0_i32, %c0_i32_0 : i32, i32
  }
  func.func @transform_3(%arg0: i32) -> (i32, i32) {
    %c0_i32 = arith.constant 0 : i32
    %c0_i32_0 = arith.constant 0 : i32
    %c0_i32_1 = arith.constant 0 : i32
    return %c0_i32, %c0_i32_0 : i32, i32
  }
  func.func @transform_4(%arg0: i32) -> (i32, i32) {
    %c0_i32 = arith.constant 0 : i32
    %c0_i32_0 = arith.constant 0 : i32
    %c0_i32_1 = arith.constant 0 : i32
    return %c0_i32, %c0_i32_0 : i32, i32
  }
  func.func @transform_5(%arg0: i32) -> (i32, i32) {
    %c0_i32 = arith.constant 0 : i32
    %c0_i32_0 = arith.constant 0 : i32
    %c0_i32_1 = arith.constant 0 : i32
    return %c0_i32, %c0_i32_0 : i32, i32
  }
  func.func @transform_6(%arg0: i32) -> (i32, i32) {
    %c0_i32 = arith.constant 0 : i32
    %c0_i32_0 = arith.constant 0 : i32
    %c0_i32_1 = arith.constant 0 : i32
    return %c0_i32, %c0_i32_0 : i32, i32
  }
  func.func @transform_7(%arg0: i32) -> (i32, i32) {
    %c0_i32 = arith.constant 0 : i32
    %c0_i32_0 = arith.constant 0 : i32
    %c0_i32_1 = arith.constant 0 : i32
    return %c0_i32, %c0_i32_0 : i32, i32
  }
  func.func @transform_8(%arg0: i32) -> (i32, i32) {
    %c0_i32 = arith.constant 0 : i32
    %c0_i32_0 = arith.constant 0 : i32
    %c0_i32_1 = arith.constant 0 : i32
    return %c0_i32, %c0_i32_0 : i32, i32
  }
  func.func @transform_9(%arg0: i32) -> (i32, i32) {
    %c0_i32 = arith.constant 0 : i32
    %c0_i32_0 = arith.constant 0 : i32
    %c0_i32_1 = arith.constant 0 : i32
    return %c0_i32, %c0_i32_0 : i32, i32
  }
  func.func @transform_10(%arg0: i32) -> (i32, i32) {
    %c0_i32 = arith.constant 0 : i32
    %c0_i32_0 = arith.constant 0 : i32
    %c0_i32_1 = arith.constant 0 : i32
    return %c0_i32, %c0_i32_0 : i32, i32
  }
  func.func @transform_11(%arg0: i32) -> (i32, i32) {
    %c0_i32 = arith.constant 0 : i32
    %c0_i32_0 = arith.constant 0 : i32
    return %arg0, %c0_i32 : i32, i32
  }
}

</mosaic_0001>

<bundles_post_ra>
// kernel: tpu_custom_call.1
= control target key start
LH: loop header
LB: loop body
LE: loop exit
PB: predicated region body
PF: predicated region fallthrough
CT: control target
= control target key end

     0   :  { %16 = vsyncpa [#allocation3], 0  ;;  %s3771_s0 = inlined_call_operand.hbm [shape: f32[8,784], index: 0, kind: input, shape index: {}]   ;;  %s3772_s1 = inlined_call_operand.hbm [shape: bf16[784,512], index: 1, kind: input, shape index: {}]   ;;  %s3773_s2 = inlined_call_operand.hbm [shape: f32[1,512], index: 2, kind: input, shape index: {}]   ;;  %s3774_s3 = inlined_call_operand.hbm [shape: bf16[512,256], index: 3, kind: input, shape index: {}]   ;;  %s3775_s4 = inlined_call_operand.vmem [shape: f32[1,256], index: 4, kind: input, shape index: {}]   ;;  %s3776_s5 = inlined_call_operand.hbm [shape: bf16[256,128], index: 5, kind: input, shape index: {}]   ;;  %s3777_s6 = inlined_call_operand.vmem [shape: f32[1,128], index: 6, kind: input, shape index: {}]   ;;  %s3778_s7 = inlined_call_operand.hbm [shape: bf16[128,128], index: 7, kind: input, shape index: {}]   ;;  %s3779_s8 = inlined_call_operand.vmem [shape: f32[1,128], index: 8, kind: input, shape index: {}]   ;;  %s3780_s9 = inlined_call_operand.hbm [shape: bf16[128,128], index: 9, kind: input, shape index: {}]   ;;  %s3781_s10 = inlined_call_operand.vmem [shape: f32[1,128], index: 10, kind: input, shape index: {}]   ;;  %s3782_s11 = inlined_call_operand.hbm [shape: f32[8,128], index: 11, kind: output, shape index: {}]  }
   0x1   :  { %17 = vsyncpa [#allocation6], 0 }
   0x2   :  { %18 = vsyncpa [#allocation9], 0 }
   0x3   :  { %19 = vsyncpa [#allocation12], 0 }
   0x4   :  { %20 = vsyncpa [#allocation4], 0  ;;  %s3585_s17 = smov [#allocation5]  }
   0x5   :  { %s36_s18 = sshll.u32 %s3585_s17, 4  ;;  %s37_s18 = int_to_ptr.vmem [resolvable:$true] %s36_s18 }
   0x6   :  { %s3423_s19 = scalar_lea.vmem %s37_s18, 25088  ;;  %p3428_p1 = scmp.lt.s32.totalorder %s37_s18, %s37_s18 }
   0x7   :  { %p3424_p0 = scmp.ne.s32.totalorder %s37_s18, %s3423_s19  ;;  %p3429_p2 = scmp.lt.s32.totalorder %s3423_s19, %s3423_s19 }
   0x9   :  { %p3430_p3 = por %p3429_p2, %p3428_p1 }
   0xb   :  { %p3431_p4 = pnand %p3430_p3, %p3424_p0 }
   0xd   :  { %3434 = shalt.err (!%p3431_p4)
}
   0xe   :  { %s3586_s20 = smov 256   ;;  %s3587_s21 = smov 16  }
   0xf   :  { %42 = dma.hbm_to_vmem [thread:$0]  %s3772_s1, 25088, %s37_s18, [#allocation6], %s3586_s20, %s3586_s20, %s3587_s21  }
  0x10   :  { %s3588_s24 = smov [#allocation8]  }
  0x11   :  { %s58_s25 = sshll.u32 %s3588_s24, 4  ;;  %s59_s25 = int_to_ptr.vmem [resolvable:$true] %s58_s25 }
  0x12   :  { %s3443_s26 = scalar_lea.vmem %s59_s25, 8192  ;;  %p3448_p6 = scmp.lt.s32.totalorder %s59_s25, %s59_s25 }
  0x13   :  { %p3444_p5 = scmp.ne.s32.totalorder %s59_s25, %s3443_s26  ;;  %p3449_p7 = scmp.lt.s32.totalorder %s3443_s26, %s3443_s26 }
  0x15   :  { %p3450_p8 = por %p3449_p7, %p3448_p6 }
  0x17   :  { %p3451_p9 = pnand %p3450_p8, %p3444_p5 }
  0x19   :  { %3454 = shalt.err (!%p3451_p9)
}
  0x1a   :  { %s3589_s27 = smov 128   ;;  %s3590_s28 = smov 8  }
  0x1b   :  { %64 = dma.hbm_to_vmem [thread:$0]  %s3774_s3, 8192, %s59_s25, [#allocation9], %s3589_s27, %s3589_s27, %s3590_s28  }
  0x1c   :  { %s3591_s12 = smov [#allocation11]   ;;  %s3592_s14 = smov [#allocation2]  }
  0x1d   :  { %s86_s13 = sshll.u32 %s3591_s12, 4  ;;  %s27_s1 = sshll.u32 %s3592_s14, 4  ;;  %s87_s13 = int_to_ptr.vmem [resolvable:$true] %s86_s13  ;;  %s28_s1 = int_to_ptr.vmem [resolvable:$true] %s27_s1 }
  0x1e   :  { %s3463_s15 = scalar_lea.vmem %s87_s13, 1024  ;;  %p3468_p11 = scmp.lt.s32.totalorder %s87_s13, %s87_s13 }
  0x1f   :  { %p3464_p10 = scmp.ne.s32.totalorder %s87_s13, %s3463_s15  ;;  %p3469_p12 = scmp.lt.s32.totalorder %s3463_s15, %s3463_s15 }
  0x21   :  { %p3470_p13 = por %p3469_p12, %p3468_p11 }
  0x23   :  { %p3471_p0 = pnand %p3470_p13, %p3464_p10 }
  0x25   :  { %3474 = shalt.err (!%p3471_p0)
}
  0x26   :  { %s3593_s16 = smov 64   ;;  %s3594_s17 = smov 4  }
  0x27   :  { %92 = dma.hbm_to_vmem [thread:$0]  %s3778_s7, 1024, %s87_s13, [#allocation12], %s3593_s16, %s3593_s16, %s3594_s17  }
  0x28   :  { %s3483_s19 = scalar_lea.vmem %s28_s1, 896  ;;  %p3488_p2 = scmp.lt.s32.totalorder %s28_s1, %s28_s1 }
  0x29   :  { %p3484_p1 = scmp.ne.s32.totalorder %s28_s1, %s3483_s19  ;;  %p3489_p3 = scmp.lt.s32.totalorder %s3483_s19, %s3483_s19 }
  0x2b   :  { %p3490_p4 = por %p3489_p3, %p3488_p2 }
  0x2d   :  { %p3491_p5 = pnand %p3490_p4, %p3484_p1 }
  0x2f   :  { %3494 = shalt.err (!%p3491_p5)
}
  0x30   :  { %30 = dma.hbm_to_vmem [thread:$0]  %s3771_s0, 896, %s28_s1, [#allocation3]  }
  0x31   :  { %s3595_s22 = smov [#allocation7]   ;;  %s3596_s24 = smov [#allocation10]  }
  0x32   :  { %s49_s23 = sshll.u32 %s3595_s22, 4  ;;  %s72_s25 = sshll.u32 %s3596_s24, 4  ;;  %s50_s23 = int_to_ptr.vmem [resolvable:$true] %s49_s23  ;;  %s73_s25 = int_to_ptr.vmem [resolvable:$true] %s72_s25 }
  0x33   :  { %s3503_s26 = scalar_lea.vmem %s50_s23, 64  ;;  %p3508_p7 = scmp.lt.s32.totalorder %s50_s23, %s50_s23 }
  0x34   :  { %p3504_p6 = scmp.ne.s32.totalorder %s50_s23, %s3503_s26  ;;  %p3509_p8 = scmp.lt.s32.totalorder %s3503_s26, %s3503_s26 }
  0x36   :  { %p3510_p9 = por %p3509_p8, %p3508_p7 }
  0x38   :  { %p3511_p10 = pnand %p3510_p9, %p3504_p6 }
  0x3a   :  { %3514 = shalt.err (!%p3511_p10)
}
  0x3b   :  { %52 = dma.hbm_to_vmem [thread:$0]  %s3773_s2, 64, %s50_s23, [#allocation6]  }
  0x3c   :  { %s3523_s28 = scalar_lea.vmem %s73_s25, 2048  ;;  %p3528_p12 = scmp.lt.s32.totalorder %s73_s25, %s73_s25 }
  0x3d   :  { %p3524_p11 = scmp.ne.s32.totalorder %s73_s25, %s3523_s28  ;;  %p3529_p13 = scmp.lt.s32.totalorder %s3523_s28, %s3523_s28 }
  0x3f   :  { %p3530_p0 = por %p3529_p13, %p3528_p12 }
  0x41   :  { %p3531_p1 = pnand %p3530_p0, %p3524_p11 }
  0x43   :  { %3534 = shalt.err (!%p3531_p1)
}
  0x44   :  { %78 = dma.hbm_to_vmem [thread:$0]  %s3776_s5, 2048, %s73_s25, [#allocation9], %s3593_s16, %s3593_s16, %s3594_s17  }
  0x45   :  { %s3597_s30 = smov [#allocation13]  }
  0x46   :  { %s100_s12 = sshll.u32 %s3597_s30, 4  ;;  %s101_s12 = int_to_ptr.vmem [resolvable:$true] %s100_s12 }
  0x47   :  { %s3543_s13 = scalar_lea.vmem %s101_s12, 1024  ;;  %p3548_p3 = scmp.lt.s32.totalorder %s101_s12, %s101_s12 }
  0x48   :  { %p3544_p2 = scmp.ne.s32.totalorder %s101_s12, %s3543_s13  ;;  %p3549_p4 = scmp.lt.s32.totalorder %s3543_s13, %s3543_s13 }
  0x4a   :  { %p3550_p5 = por %p3549_p4, %p3548_p3 }
  0x4c   :  { %p3551_p6 = pnand %p3550_p5, %p3544_p2 }
  0x4e   :  { %3554 = shalt.err (!%p3551_p6)
}
  0x4f   :  { %106 = dma.hbm_to_vmem [thread:$0]  %s3780_s9, 1024, %s101_s12, [#allocation12], %s3593_s16, %s3593_s16, %s3594_s17  }
  0x50   :  { %3575 = dma.done.wait [#allocation3], 896  }
  0x51   :  { %3576 = vsyncadd [#allocation3], 4294966400 }
  0x52   :  { %3577 = dma.done.wait [#allocation6], 25152  }
  0x53   :  { %3578 = vsyncadd [#allocation6], 4294942144 }
  0x54   :  { %3579 = dma.done.wait [#allocation9], 10240  }
  0x55   :  { %3580 = vsyncadd [#allocation9], 4294957056 }
  0x56   :  { %3581 = dma.done.wait [#allocation12], 2048  }
  0x57   :  { %3582 = vsyncadd [#allocation12], 4294965248  ;;  %v2989_v0 = vld [vmem:[#allocation5 + $0xe4] ss:$16 sps:$4 sm:$0xff]   ;;  %v2993_v2 = vld [vmem:[#allocation5 + $0xe0] ss:$16 sps:$4 sm:$0xff]  }
  0x58   :  { %v2991_v1 = vld [vmem:[#allocation5 + $0x2e4] ss:$16 sps:$4 sm:$0xff]   ;;  %1479 = vmatprep.subr.bf16.mxu0 %v2989_v0  ;;  %v2994_v3 = vld [vmem:[#allocation5 + $0x2e0] ss:$16 sps:$4 sm:$0xff]   ;;  %vm1475_vm0 = vcmask 130048   ;;  %vm3600_vm1 = vmmov 0  }
  0x59   :  { %1520 = vmatprep.subr.bf16.mxu1 %v2991_v1  ;;  %v2995_v4 = vld [vmem:[#allocation5 + $0xc4] ss:$16 sps:$4 sm:$0xff]   ;;  %1480 = vmatpush1.bf16.msra.mxu0 %v2993_v2  ;;  %v2999_v6 = vld [vmem:[#allocation5 + $0xc0] ss:$16 sps:$4 sm:$0xff]  }
  0x5a   :  { %1521 = vmatpush1.bf16.msra.mxu1 %v2994_v3  ;;  %v2997_v5 = vld [vmem:[#allocation5 + $0x2c4] ss:$16 sps:$4 sm:$0xff]   ;;  %1481 = vmatprep.subr.bf16.mxu0 %v2995_v4  ;;  %v3000_v7 = vld [vmem:[#allocation5 + $0x2c0] ss:$16 sps:$4 sm:$0xff]   ;;  %v460_v4 = vld [vmem:[#allocation2] sm:$0xff] }
  0x5b   :  { %1522 = vmatprep.subr.bf16.mxu1 %v2997_v5  ;;  %v3001_v8 = vld [vmem:[#allocation5 + $0xa4] ss:$16 sps:$4 sm:$0xff]   ;;  %v3005_v10 = vld [vmem:[#allocation5 + $0xa0] ss:$16 sps:$4 sm:$0xff]   ;;  %v462_v5 = vld [vmem:[#allocation2 + $0x10] sm:$0xff] }
  0x5c   :  { %v3003_v9 = vld [vmem:[#allocation5 + $0x2a4] ss:$16 sps:$4 sm:$0xff]   ;;  %v3006_v11 = vld [vmem:[#allocation5 + $0x2a0] ss:$16 sps:$4 sm:$0xff]  }
  0x5d   :  { %1482 = vmatpush1.bf16.msra.mxu0 %v2999_v6  ;;  %v3007_v12 = vld [vmem:[#allocation5 + $0x84] ss:$16 sps:$4 sm:$0xff]   ;;  %v3011_v14 = vld [vmem:[#allocation5 + $0x80] ss:$16 sps:$4 sm:$0xff]  }
  0x5e   :  { %1523 = vmatpush1.bf16.msra.mxu1 %v3000_v7  ;;  %1483 = vmatprep.subr.bf16.mxu0 %v3001_v8  ;;  %v3009_v13 = vld [vmem:[#allocation5 + $0x284] ss:$16 sps:$4 sm:$0xff]   ;;  %v3012_v15 = vld [vmem:[#allocation5 + $0x280] ss:$16 sps:$4 sm:$0xff]   ;;  %v3698_v8 = vpack.c.bf16 %v460_v4, %v460_v4  ;;  %v3168_v4 = vld [vmem:[#allocation5 + $0x16c] ss:$16 sps:$4 sm:$0xff]  }
  0x5f   :  { %1524 = vmatprep.subr.bf16.mxu1 %v3003_v9  ;;  %v3013_v16 = vld [vmem:[#allocation5 + $0x64] ss:$16 sps:$4 sm:$0xff]   ;;  %v3017_v18 = vld [vmem:[#allocation5 + $0x60] ss:$16 sps:$4 sm:$0xff]   ;;  %v3700_v9 = vpack.c.bf16 %v462_v5, %v462_v5 }
  0x60   :  { %v3015_v17 = vld [vmem:[#allocation5 + $0x264] ss:$16 sps:$4 sm:$0xff]   ;;  %v3018_v19 = vld [vmem:[#allocation5 + $0x260] ss:$16 sps:$4 sm:$0xff]  }
  0x61   :  { %1484 = vmatpush1.bf16.msra.mxu0 %v3005_v10  ;;  %v3019_v20 = vld [vmem:[#allocation5 + $0x44] ss:$16 sps:$4 sm:$0xff]   ;;  %v3023_v22 = vld [vmem:[#allocation5 + $0x40] ss:$16 sps:$4 sm:$0xff]  }
  0x62   :  { %1525 = vmatpush1.bf16.msra.mxu1 %v3006_v11  ;;  %1485 = vmatprep.subr.bf16.mxu0 %v3007_v12  ;;  %v3021_v21 = vld [vmem:[#allocation5 + $0x244] ss:$16 sps:$4 sm:$0xff]   ;;  %v3024_v23 = vld [vmem:[#allocation5 + $0x240] ss:$16 sps:$4 sm:$0xff]  }
  0x63   :  { %1526 = vmatprep.subr.bf16.mxu1 %v3009_v13  ;;  %v3025_v24 = vld [vmem:[#allocation5 + $0x24] ss:$16 sps:$4 sm:$0xff]   ;;  %v3029_v26 = vld [vmem:[#allocation5 + $0x20] ss:$16 sps:$4 sm:$0xff]   ;;  %v3096_v13 = vld [vmem:[#allocation5 + $0xec] ss:$16 sps:$4 sm:$0xff]  }
  0x64   :  { %v3027_v25 = vld [vmem:[#allocation5 + $0x224] ss:$16 sps:$4 sm:$0xff]   ;;  %v3030_v27 = vld [vmem:[#allocation5 + $0x220] ss:$16 sps:$4 sm:$0xff]  }
  0x65   :  { %1486 = vmatpush1.bf16.msra.mxu0 %v3011_v14  ;;  %v3031_v28 = vld [vmem:[#allocation5 + $0x4] ss:$16 sps:$4 sm:$0xff]   ;;  %v3035_v30 = vld [vmem:[#allocation5] ss:$16 sps:$4 sm:$0xff]  }
  0x66   :  { %1527 = vmatpush1.bf16.msra.mxu1 %v3012_v15  ;;  %1487 = vmatprep.subr.bf16.mxu0 %v3013_v16  ;;  %v3033_v29 = vld [vmem:[#allocation5 + $0x204] ss:$16 sps:$4 sm:$0xff]   ;;  %v3036_v31 = vld [vmem:[#allocation5 + $0x200] ss:$16 sps:$4 sm:$0xff]   ;;  %v466_v15 = vld [vmem:[#allocation2 + $0x30] sm:$0xff]  ;;  %v3598_v16 = vmov 0  }
  0x67   :  { %1528 = vmatprep.subr.bf16.mxu1 %v3015_v17  ;;  %v3037_v32 = vld [vmem:[#allocation5 + $0x1e4] ss:$16 sps:$4 sm:$0xff]   ;;  %v3041_v34 = vld [vmem:[#allocation5 + $0x1e0] ss:$16 sps:$4 sm:$0xff]  }
  0x68   :  { %v3039_v33 = vld [vmem:[#allocation5 + $0x3e4] ss:$16 sps:$4 sm:$0xff]   ;;  %v3042_v35 = vld [vmem:[#allocation5 + $0x3e0] ss:$16 sps:$4 sm:$0xff]  }
  0x69   :  { %1488 = vmatpush1.bf16.msra.mxu0 %v3017_v18  ;;  %v3043_v36 = vld [vmem:[#allocation5 + $0x1c4] ss:$16 sps:$4 sm:$0xff]   ;;  %v3047_v38 = vld [vmem:[#allocation5 + $0x1c0] ss:$16 sps:$4 sm:$0xff]   ;;  %v3094_v18 = vld [vmem:[#allocation5 + $0xe8] ss:$16 sps:$4 sm:$0xff]  }
  0x6a   :  { %1529 = vmatpush1.bf16.msra.mxu1 %v3018_v19  ;;  %1489 = vmatprep.subr.bf16.mxu0 %v3019_v20  ;;  %v3045_v37 = vld [vmem:[#allocation5 + $0x3c4] ss:$16 sps:$4 sm:$0xff]   ;;  %v3048_v39 = vld [vmem:[#allocation5 + $0x3c0] ss:$16 sps:$4 sm:$0xff]   ;;  %v3705_v19 = vpack.c.bf16 %v466_v15, %v466_v15  ;;  %v464_v15 = vld [vmem:[#allocation2 + $0x20] sm:$0xff] }
  0x6b   :  { %1530 = vmatprep.subr.bf16.mxu1 %v3021_v21  ;;  %v3049_v40 = vld [vmem:[#allocation5 + $0x1a4] ss:$16 sps:$4 sm:$0xff]   ;;  %v3053_v42 = vld [vmem:[#allocation5 + $0x1a0] ss:$16 sps:$4 sm:$0xff]   ;;  %v3102_v21 = vld [vmem:[#allocation5 + $0xcc] ss:$16 sps:$4 sm:$0xff]  }
  0x6c   :  { %v3051_v41 = vld [vmem:[#allocation5 + $0x3a4] ss:$16 sps:$4 sm:$0xff]   ;;  %v3054_v43 = vld [vmem:[#allocation5 + $0x3a0] ss:$16 sps:$4 sm:$0xff]  }
  0x6d   :  { %1490 = vmatpush1.bf16.msra.mxu0 %v3023_v22  ;;  %v3055_v44 = vld [vmem:[#allocation5 + $0x184] ss:$16 sps:$4 sm:$0xff]   ;;  %v3059_v47 = vld [vmem:[#allocation5 + $0x180] ss:$16 sps:$4 sm:$0xff]  }
  0x6e   :  { %1531 = vmatpush1.bf16.msra.mxu1 %v3024_v23  ;;  %1491 = vmatprep.subr.bf16.mxu0 %v3025_v24  ;;  %v3057_v45 = vld [vmem:[#allocation5 + $0x384] ss:$16 sps:$4 sm:$0xff]   ;;  %v3060_v48 = vld [vmem:[#allocation5 + $0x380] ss:$16 sps:$4 sm:$0xff]   ;;  %v3100_v23 = vld [vmem:[#allocation5 + $0xc8] ss:$16 sps:$4 sm:$0xff]  }
  0x6f   :  { %1532 = vmatprep.subr.bf16.mxu1 %v3027_v25  ;;  %v461_v46 = vld [vmem:[#allocation2 + $0x8] sm:$0xff]  ;;  %v463_v50 = vld [vmem:[#allocation2 + $0x18] sm:$0xff]  ;;  %v3108_v25 = vld [vmem:[#allocation5 + $0xac] ss:$16 sps:$4 sm:$0xff]  }
  0x70   :  { %v3692_v49 = vpack.c.bf16 %v461_v46, %v461_v46  ;;  %v3061_v51 = vld [vmem:[#allocation5 + $0x164] ss:$16 sps:$4 sm:$0xff]   ;;  %v3694_v52 = vpack.c.bf16 %v463_v50, %v463_v50  ;;  %v3065_v54 = vld [vmem:[#allocation5 + $0x160] ss:$16 sps:$4 sm:$0xff]  }
  0x71   :  { %1492 = vmatpush1.bf16.msra.mxu0 %v3029_v26  ;;  %v3063_v53 = vld [vmem:[#allocation5 + $0x364] ss:$16 sps:$4 sm:$0xff]   ;;  %v3066_v55 = vld [vmem:[#allocation5 + $0x360] ss:$16 sps:$4 sm:$0xff]  }
  0x72   :  { %1533 = vmatpush1.bf16.msra.mxu1 %v3030_v27  ;;  %1493 = vmatprep.subr.bf16.mxu0 %v3031_v28  ;;  %v3067_v56 = vld [vmem:[#allocation5 + $0x144] ss:$16 sps:$4 sm:$0xff]   ;;  %v3071_v58 = vld [vmem:[#allocation5 + $0x140] ss:$16 sps:$4 sm:$0xff]   ;;  %v3106_v27 = vld [vmem:[#allocation5 + $0xa8] ss:$16 sps:$4 sm:$0xff]  }
  0x73   :  { %1534 = vmatprep.subr.bf16.mxu1 %v3033_v29  ;;  %1511 = vmatprep.mubr.bf16.mxu0 %v3692_v49  ;;  %v3069_v57 = vld [vmem:[#allocation5 + $0x344] ss:$16 sps:$4 sm:$0xff]   ;;  %v3072_v59 = vld [vmem:[#allocation5 + $0x340] ss:$16 sps:$4 sm:$0xff]   ;;  %v3114_v29 = vld [vmem:[#allocation5 + $0x8c] ss:$16 sps:$4 sm:$0xff]  }
  0x74   :  { %1552 = vmatprep.mubr.bf16.mxu1 %v3694_v52  ;;  %v3073_v60 = vld [vmem:[#allocation5 + $0x124] ss:$16 sps:$4 sm:$0xff]   ;;  %v3077_v62 = vld [vmem:[#allocation5 + $0x120] ss:$16 sps:$4 sm:$0xff]  }
  0x75   :  { %1494 = vmatpush1.bf16.msra.mxu0 %v3035_v30  ;;  %v3075_v61 = vld [vmem:[#allocation5 + $0x324] ss:$16 sps:$4 sm:$0xff]   ;;  %v3078_v63 = vld [vmem:[#allocation5 + $0x320] ss:$16 sps:$4 sm:$0xff]  }
  0x76   :  { %1535 = vmatpush1.bf16.msra.mxu1 %v3036_v31  ;;  %1495 = vmatprep.subr.bf16.mxu0 %v3037_v32  ;;  %v3079_v0 = vld [vmem:[#allocation5 + $0x104] ss:$16 sps:$4 sm:$0xff]   ;;  %v3083_v2 = vld [vmem:[#allocation5 + $0x100] ss:$16 sps:$4 sm:$0xff]   ;;  %v3112_v31 = vld [vmem:[#allocation5 + $0x88] ss:$16 sps:$4 sm:$0xff]  }
  0x77   :  { %1536 = vmatprep.subr.bf16.mxu1 %v3039_v33  ;;  %v3081_v1 = vld [vmem:[#allocation5 + $0x304] ss:$16 sps:$4 sm:$0xff]   ;;  %v3084_v3 = vld [vmem:[#allocation5 + $0x300] ss:$16 sps:$4 sm:$0xff]   ;;  %v3120_v33 = vld [vmem:[#allocation5 + $0x6c] ss:$16 sps:$4 sm:$0xff]  }
  0x78   :  { %v3087_v6 = vld [vmem:[#allocation5 + $0x4e4] ss:$16 sps:$4 sm:$0xff]   ;;  %v3085_v10 = vld [vmem:[#allocation5 + $0x4e0] ss:$16 sps:$4 sm:$0xff]  }
  0x79   :  { %1496 = vmatpush2.bf16.msra.mxu0 %v3041_v34  ;;  %v3090_v7 = vld [vmem:[#allocation5 + $0x604] ss:$16 sps:$4 sm:$0xff]   ;;  %v3088_v11 = vld [vmem:[#allocation5 + $0x600] ss:$16 sps:$4 sm:$0xff]  }
  0x7a   :  { %1537 = vmatpush2.bf16.msra.mxu1 %v3042_v35  ;;  %1497 = vmatprep.subr.bf16.mxu0 %v3043_v36  ;;  %v3093_v12 = vld [vmem:[#allocation5 + $0x4c4] ss:$16 sps:$4 sm:$0xff]   ;;  %v3091_v14 = vld [vmem:[#allocation5 + $0x4c0] ss:$16 sps:$4 sm:$0xff]  }
  0x7b   :  { %1538 = vmatprep.subr.bf16.mxu1 %v3045_v37  ;;  %v3099_v17 = vld [vmem:[#allocation5 + $0x4a4] ss:$16 sps:$4 sm:$0xff]   ;;  %v3097_v20 = vld [vmem:[#allocation5 + $0x4a0] ss:$16 sps:$4 sm:$0xff]   ;;  %v3118_v37 = vld [vmem:[#allocation5 + $0x68] ss:$16 sps:$4 sm:$0xff]  }
  0x7c   :  { %v3105_v22 = vld [vmem:[#allocation5 + $0x484] ss:$16 sps:$4 sm:$0xff]   ;;  %v3103_v24 = vld [vmem:[#allocation5 + $0x480] ss:$16 sps:$4 sm:$0xff]  }
  0x7d   :  { %1498 = vmatpush2.bf16.msra.mxu0 %v3047_v38  ;;  %v3111_v26 = vld [vmem:[#allocation5 + $0x464] ss:$16 sps:$4 sm:$0xff]   ;;  %v3109_v28 = vld [vmem:[#allocation5 + $0x460] ss:$16 sps:$4 sm:$0xff]  }
  0x7e   :  { %1539 = vmatpush2.bf16.msra.mxu1 %v3048_v39  ;;  %1499 = vmatprep.subr.bf16.mxu0 %v3049_v40  ;;  %v3117_v30 = vld [vmem:[#allocation5 + $0x444] ss:$16 sps:$4 sm:$0xff]   ;;  %v3115_v32 = vld [vmem:[#allocation5 + $0x440] ss:$16 sps:$4 sm:$0xff]   ;;  %v3126_v39 = vld [vmem:[#allocation5 + $0x4c] ss:$16 sps:$4 sm:$0xff]  }
  0x7f   :  { %1540 = vmatprep.subr.bf16.mxu1 %v3051_v41  ;;  %v3123_v34 = vld [vmem:[#allocation5 + $0x424] ss:$16 sps:$4 sm:$0xff]   ;;  %v3121_v38 = vld [vmem:[#allocation5 + $0x420] ss:$16 sps:$4 sm:$0xff]   ;;  %v3124_v41 = vld [vmem:[#allocation5 + $0x48] ss:$16 sps:$4 sm:$0xff]  }
  0x80   :  { %v465_v35 = vld [vmem:[#allocation2 + $0x28] sm:$0xff] }
  0x81   :  { %1500 = vmatpush2.bf16.msra.mxu0 %v3053_v42  ;;  %v3710_v36 = vpack.c.bf16 %v465_v35, %v465_v35  ;;  %v3129_v40 = vld [vmem:[#allocation5 + $0x404] ss:$16 sps:$4 sm:$0xff]   ;;  %v3127_v42 = vld [vmem:[#allocation5 + $0x400] ss:$16 sps:$4 sm:$0xff]   ;;  %v3207_v35 = vld [vmem:[#allocation5 + $0x26c] ss:$16 sps:$4 sm:$0xff]  }
  0x82   :  { %1541 = vmatpush2.bf16.msra.mxu1 %v3054_v43  ;;  %1501 = vmatprep.subr.bf16.mxu0 %v3055_v44  ;;  %v3132_v43 = vld [vmem:[#allocation5 + $0x2c] ss:$16 sps:$4 sm:$0xff]   ;;  %v3135_v44 = vld [vmem:[#allocation5 + $0x5e4] ss:$16 sps:$4 sm:$0xff]   ;;  %v3133_v46 = vld [vmem:[#allocation5 + $0x5e0] ss:$16 sps:$4 sm:$0xff]  }
  0x83   :  { %1542 = vmatprep.subr.bf16.mxu1 %v3057_v45  ;;  %v3130_v45 = vld [vmem:[#allocation5 + $0x28] ss:$16 sps:$4 sm:$0xff]   ;;  %v3139_v50 = vld [vmem:[#allocation5 + $0x5c0] ss:$16 sps:$4 sm:$0xff]   ;;  %v3171_v5 = vld [vmem:[#allocation5 + $0x524] ss:$16 sps:$4 sm:$0xff]  }
  0x85   :  { %1502 = vmatpush2.bf16.msra.mxu0 %v3059_v47  ;;  %v3138_v47 = vld [vmem:[#allocation5 + $0xc] ss:$16 sps:$4 sm:$0xff]  }
  0x86   :  { %1543 = vmatpush2.bf16.msra.mxu1 %v3060_v48  ;;  %1503 = vmatprep.subr.bf16.mxu0 %v3061_v51  ;;  %v3141_v48 = vld [vmem:[#allocation5 + $0x5c4] ss:$16 sps:$4 sm:$0xff]   ;;  %v3144_v51 = vld [vmem:[#allocation5 + $0x1ec] ss:$16 sps:$4 sm:$0xff]  }
  0x87   :  { %1544 = vmatprep.subr.bf16.mxu1 %v3063_v53  ;;  %v3147_v53 = vld [vmem:[#allocation5 + $0x5a4] ss:$16 sps:$4 sm:$0xff]  }
  0x89   :  { %1504 = vmatpush2.bf16.msra.mxu0 %v3065_v54  ;;  %v3142_v54 = vld [vmem:[#allocation5 + $0x1e8] ss:$16 sps:$4 sm:$0xff]  }
  0x8a   :  { %1545 = vmatpush2.bf16.msra.mxu1 %v3066_v55  ;;  %1505 = vmatprep.subr.bf16.mxu0 %v3067_v56  ;;  %v3145_v55 = vld [vmem:[#allocation5 + $0x5a0] ss:$16 sps:$4 sm:$0xff]   ;;  %v3150_v56 = vld [vmem:[#allocation5 + $0x1cc] ss:$16 sps:$4 sm:$0xff]  }
  0x8b   :  { %1546 = vmatprep.subr.bf16.mxu1 %v3069_v57  ;;  %v3153_v57 = vld [vmem:[#allocation5 + $0x584] ss:$16 sps:$4 sm:$0xff]  }
  0x8d   :  { %1506 = vmatpush2.bf16.msra.mxu0 %v3071_v58  ;;  %v3148_v58 = vld [vmem:[#allocation5 + $0x1c8] ss:$16 sps:$4 sm:$0xff]  }
  0x8e   :  { %1547 = vmatpush2.bf16.msra.mxu1 %v3072_v59  ;;  %1507 = vmatprep.subr.bf16.mxu0 %v3073_v60  ;;  %v3151_v59 = vld [vmem:[#allocation5 + $0x580] ss:$16 sps:$4 sm:$0xff]   ;;  %v3156_v60 = vld [vmem:[#allocation5 + $0x1ac] ss:$16 sps:$4 sm:$0xff]  }
  0x8f   :  { %1548 = vmatprep.subr.bf16.mxu1 %v3075_v61  ;;  %v3159_v61 = vld [vmem:[#allocation5 + $0x564] ss:$16 sps:$4 sm:$0xff]  }
  0x91   :  { %1508 = vmatpush2.bf16.msra.mxu0 %v3077_v62  ;;  %v3154_v62 = vld [vmem:[#allocation5 + $0x1a8] ss:$16 sps:$4 sm:$0xff]  }
  0x92   :  { %1549 = vmatpush2.bf16.msra.mxu1 %v3078_v63  ;;  %1509 = vmatprep.subr.bf16.mxu0 %v3079_v0  ;;  %v3157_v63 = vld [vmem:[#allocation5 + $0x560] ss:$16 sps:$4 sm:$0xff]   ;;  %v3162_v0 = vld [vmem:[#allocation5 + $0x18c] ss:$16 sps:$4 sm:$0xff]  }
  0x93   :  { %1550 = vmatprep.subr.bf16.mxu1 %v3081_v1  ;;  %v3165_v1 = vld [vmem:[#allocation5 + $0x544] ss:$16 sps:$4 sm:$0xff]  }
  0x95   :  { %1510 = vmatpush2.bf16.msra.mxu0 %v3083_v2  ;;  %v3160_v2 = vld [vmem:[#allocation5 + $0x188] ss:$16 sps:$4 sm:$0xff]  }
  0x96   :  { %1551 = vmatpush2.bf16.msra.mxu1 %v3084_v3  ;;  %1561 = vmatprep.subr.bf16.mxu0 %v3087_v6  ;;  %v3163_v3 = vld [vmem:[#allocation5 + $0x540] ss:$16 sps:$4 sm:$0xff]   ;;  %v3166_v6 = vld [vmem:[#allocation5 + $0x168] ss:$16 sps:$4 sm:$0xff]  }
  0x97   :  { %1616 = vmatprep.subr.bf16.mxu1 %v3090_v7  ;;  %v3169_v7 = vld [vmem:[#allocation5 + $0x520] ss:$16 sps:$4 sm:$0xff]  }
  0x98   :  { %1512 = vmatmul.mubr.bf16.vlgmr.msra.gmra.mxu0 %v3698_v8 }
  0x99   :  { %1553 = vmatmul.mubr.bf16.vlgmr.msra.gmra.mxu1 %v3700_v9  ;;  %1562 = vmatpush1.bf16.msra.mxu0 %v3085_v10  ;;  %v3174_v10 = vld [vmem:[#allocation5 + $0x14c] ss:$16 sps:$4 sm:$0xff]  }
  0x9a   :  { %1617 = vmatpush1.bf16.msra.mxu1 %v3088_v11  ;;  %1563 = vmatprep.subr.bf16.mxu0 %v3093_v12  ;;  %v3177_v11 = vld [vmem:[#allocation5 + $0x504] ss:$16 sps:$4 sm:$0xff]   ;;  %v3172_v12 = vld [vmem:[#allocation5 + $0x148] ss:$16 sps:$4 sm:$0xff]  }
  0x9b   :  { %1634 = vmatprep.mubr.bf16.mxu1 %v3598_v16  ;;  %1643 = vmatprep.subr.bf16.mxu1 %v3096_v13  ;;  %v3175_v13 = vld [vmem:[#allocation5 + $0x500] ss:$16 sps:$4 sm:$0xff]  }
  0x9c   :  { %1593 = vmatprep.mubr.bf16.mxu0 %v3710_v36 }
  0x9d   :  { %1564 = vmatpush1.bf16.msra.mxu0 %v3091_v14  ;;  %v3180_v14 = vld [vmem:[#allocation5 + $0x12c] ss:$16 sps:$4 sm:$0xff]  }
  0x9e   :  { %1565 = vmatprep.subr.bf16.mxu0 %v3099_v17  ;;  %v3183_v17 = vld [vmem:[#allocation5 + $0x2ec] ss:$16 sps:$4 sm:$0xff]  }
  0xa1   :  { %2791 = vmatmul.mubr.msk.bf16.vlgmr.msra.gmra.mxu1 %vm1475_vm0, %v3705_v19  ;;  %1566 = vmatpush1.bf16.msra.mxu0 %v3097_v20  ;;  %v3713_v20 = vpack.c.bf16 %v464_v15, %v464_v15  ;;  %v3270_v15 = vld [vmem:[#allocation5 + $0x54c] ss:$16 sps:$4 sm:$0xff]  }
  0xa2   :  { %1644 = vmatpush1.bf16.msra.mxu1 %v3094_v18  ;;  %1567 = vmatprep.subr.bf16.mxu0 %v3105_v22  ;;  %v3178_v18 = vld [vmem:[#allocation5 + $0x128] ss:$16 sps:$4 sm:$0xff]   ;;  %v3186_v22 = vld [vmem:[#allocation5 + $0x10c] ss:$16 sps:$4 sm:$0xff]  }
  0xa3   :  { %1645 = vmatprep.subr.bf16.mxu1 %v3102_v21  ;;  %1675 = vmatprep.mubr.bf16.mxu1 %v3692_v49  ;;  %v3136_v49 = vld [vmem:[#allocation5 + $0x8] ss:$16 sps:$4 sm:$0xff]  }
  0xa4   :  { %v3181_v21 = vld [vmem:[#allocation5 + $0x2e8] ss:$16 sps:$4 sm:$0xff]  }
  0xa5   :  { %1568 = vmatpush1.bf16.msra.mxu0 %v3103_v24  ;;  %v3184_v24 = vld [vmem:[#allocation5 + $0x108] ss:$16 sps:$4 sm:$0xff]  }
  0xa6   :  { %1646 = vmatpush1.bf16.msra.mxu1 %v3100_v23  ;;  %1569 = vmatprep.subr.bf16.mxu0 %v3111_v26  ;;  %v3189_v23 = vld [vmem:[#allocation5 + $0x2cc] ss:$16 sps:$4 sm:$0xff]  }
  0xa7   :  { %1647 = vmatprep.subr.bf16.mxu1 %v3108_v25  ;;  %v3187_v25 = vld [vmem:[#allocation5 + $0x2c8] ss:$16 sps:$4 sm:$0xff]   ;;  %v3192_v26 = vld [vmem:[#allocation5 + $0x4ec] ss:$16 sps:$4 sm:$0xff]  }
  0xa9   :  { %1570 = vmatpush1.bf16.msra.mxu0 %v3109_v28  ;;  %v3190_v28 = vld [vmem:[#allocation5 + $0x4e8] ss:$16 sps:$4 sm:$0xff]  }
  0xaa   :  { %1648 = vmatpush1.bf16.msra.mxu1 %v3106_v27  ;;  %1571 = vmatprep.subr.bf16.mxu0 %v3117_v30  ;;  %v3195_v27 = vld [vmem:[#allocation5 + $0x2ac] ss:$16 sps:$4 sm:$0xff]  }
  0xab   :  { %1649 = vmatprep.subr.bf16.mxu1 %v3114_v29  ;;  %v3193_v29 = vld [vmem:[#allocation5 + $0x2a8] ss:$16 sps:$4 sm:$0xff]   ;;  %v3198_v30 = vld [vmem:[#allocation5 + $0x4cc] ss:$16 sps:$4 sm:$0xff]  }
  0xad   :  { %1572 = vmatpush1.bf16.msra.mxu0 %v3115_v32  ;;  %v3196_v32 = vld [vmem:[#allocation5 + $0x4c8] ss:$16 sps:$4 sm:$0xff]  }
  0xae   :  { %1650 = vmatpush1.bf16.msra.mxu1 %v3112_v31  ;;  %1573 = vmatprep.subr.bf16.mxu0 %v3123_v34  ;;  %v3201_v31 = vld [vmem:[#allocation5 + $0x28c] ss:$16 sps:$4 sm:$0xff]  }
  0xaf   :  { %1651 = vmatprep.subr.bf16.mxu1 %v3120_v33  ;;  %v3199_v33 = vld [vmem:[#allocation5 + $0x288] ss:$16 sps:$4 sm:$0xff]   ;;  %v3204_v34 = vld [vmem:[#allocation5 + $0x4ac] ss:$16 sps:$4 sm:$0xff]  }
  0xb1   :  { %1574 = vmatpush1.bf16.msra.mxu0 %v3121_v38  ;;  %v3210_v38 = vld [vmem:[#allocation5 + $0x48c] ss:$16 sps:$4 sm:$0xff]  }
  0xb2   :  { %1652 = vmatpush1.bf16.msra.mxu1 %v3118_v37  ;;  %1575 = vmatprep.subr.bf16.mxu0 %v3129_v40  ;;  %v3202_v37 = vld [vmem:[#allocation5 + $0x4a8] ss:$16 sps:$4 sm:$0xff]  }
  0xb3   :  { %1653 = vmatprep.subr.bf16.mxu1 %v3126_v39  ;;  %v3213_v39 = vld [vmem:[#allocation5 + $0x24c] ss:$16 sps:$4 sm:$0xff]   ;;  %v3208_v40 = vld [vmem:[#allocation5 + $0x488] ss:$16 sps:$4 sm:$0xff]  }
  0xb5   :  { %1576 = vmatpush1.bf16.msra.mxu0 %v3127_v42  ;;  %v3219_v42 = vld [vmem:[#allocation5 + $0x22c] ss:$16 sps:$4 sm:$0xff]  }
  0xb6   :  { %1654 = vmatpush1.bf16.msra.mxu1 %v3124_v41  ;;  %1577 = vmatprep.subr.bf16.mxu0 %v3135_v44  ;;  %v3216_v41 = vld [vmem:[#allocation5 + $0x46c] ss:$16 sps:$4 sm:$0xff]   ;;  %v3217_v44 = vld [vmem:[#allocation5 + $0x228] ss:$16 sps:$4 sm:$0xff]  }
  0xb7   :  { %1655 = vmatprep.subr.bf16.mxu1 %v3132_v43  ;;  %v3214_v43 = vld [vmem:[#allocation5 + $0x468] ss:$16 sps:$4 sm:$0xff]  }
  0xb9   :  { %1578 = vmatpush2.bf16.msra.mxu0 %v3133_v46  ;;  %v3220_v46 = vld [vmem:[#allocation5 + $0x448] ss:$16 sps:$4 sm:$0xff]  }
  0xba   :  { %1656 = vmatpush1.bf16.msra.mxu1 %v3130_v45  ;;  %1579 = vmatprep.subr.bf16.mxu0 %v3141_v48  ;;  %v3225_v45 = vld [vmem:[#allocation5 + $0x20c] ss:$16 sps:$4 sm:$0xff]  }
  0xbb   :  { %1657 = vmatprep.subr.bf16.mxu1 %v3138_v47  ;;  %v3223_v47 = vld [vmem:[#allocation5 + $0x208] ss:$16 sps:$4 sm:$0xff]   ;;  %v3228_v48 = vld [vmem:[#allocation5 + $0x42c] ss:$16 sps:$4 sm:$0xff]  }
  0xbd   :  { %1580 = vmatpush2.bf16.msra.mxu0 %v3139_v50  ;;  %v3226_v50 = vld [vmem:[#allocation5 + $0x428] ss:$16 sps:$4 sm:$0xff]  }
  0xbe   :  { %1658 = vmatpush1.bf16.msra.mxu1 %v3136_v49  ;;  %1581 = vmatprep.subr.bf16.mxu0 %v3147_v53  ;;  %v3231_v49 = vld [vmem:[#allocation5 + $0x3ec] ss:$16 sps:$4 sm:$0xff]  }
  0xbf   :  { %1659 = vmatprep.subr.bf16.mxu1 %v3144_v51  ;;  %v3229_v51 = vld [vmem:[#allocation5 + $0x3e8] ss:$16 sps:$4 sm:$0xff]   ;;  %v3234_v53 = vld [vmem:[#allocation5 + $0x40c] ss:$16 sps:$4 sm:$0xff]  }
  0xc1   :  { %1582 = vmatpush2.bf16.msra.mxu0 %v3145_v55  ;;  %v3232_v55 = vld [vmem:[#allocation5 + $0x408] ss:$16 sps:$4 sm:$0xff]  }
  0xc2   :  { %1660 = vmatpush2.bf16.msra.mxu1 %v3142_v54  ;;  %1583 = vmatprep.subr.bf16.mxu0 %v3153_v57  ;;  %v3237_v54 = vld [vmem:[#allocation5 + $0x3cc] ss:$16 sps:$4 sm:$0xff]  }
  0xc3   :  { %1661 = vmatprep.subr.bf16.mxu1 %v3150_v56  ;;  %v3235_v56 = vld [vmem:[#allocation5 + $0x3c8] ss:$16 sps:$4 sm:$0xff]   ;;  %v3240_v57 = vld [vmem:[#allocation5 + $0x5ec] ss:$16 sps:$4 sm:$0xff]  }
  0xc5   :  { %1584 = vmatpush2.bf16.msra.mxu0 %v3151_v59  ;;  %v3238_v59 = vld [vmem:[#allocation5 + $0x5e8] ss:$16 sps:$4 sm:$0xff]  }
  0xc6   :  { %1662 = vmatpush2.bf16.msra.mxu1 %v3148_v58  ;;  %1585 = vmatprep.subr.bf16.mxu0 %v3159_v61  ;;  %v3243_v58 = vld [vmem:[#allocation5 + $0x3ac] ss:$16 sps:$4 sm:$0xff]  }
  0xc7   :  { %1663 = vmatprep.subr.bf16.mxu1 %v3156_v60  ;;  %v3241_v60 = vld [vmem:[#allocation5 + $0x3a8] ss:$16 sps:$4 sm:$0xff]   ;;  %v3246_v61 = vld [vmem:[#allocation5 + $0x5cc] ss:$16 sps:$4 sm:$0xff]  }
  0xc9   :  { %1586 = vmatpush2.bf16.msra.mxu0 %v3157_v63  ;;  %v3244_v63 = vld [vmem:[#allocation5 + $0x5c8] ss:$16 sps:$4 sm:$0xff]  }
  0xca   :  { %1664 = vmatpush2.bf16.msra.mxu1 %v3154_v62  ;;  %1587 = vmatprep.subr.bf16.mxu0 %v3165_v1  ;;  %v3249_v62 = vld [vmem:[#allocation5 + $0x38c] ss:$16 sps:$4 sm:$0xff]  }
  0xcb   :  { %1665 = vmatprep.subr.bf16.mxu1 %v3162_v0  ;;  %v3247_v0 = vld [vmem:[#allocation5 + $0x388] ss:$16 sps:$4 sm:$0xff]   ;;  %v3252_v1 = vld [vmem:[#allocation5 + $0x5ac] ss:$16 sps:$4 sm:$0xff]  }
  0xcd   :  { %1588 = vmatpush2.bf16.msra.mxu0 %v3163_v3  ;;  %v3250_v3 = vld [vmem:[#allocation5 + $0x5a8] ss:$16 sps:$4 sm:$0xff]  }
  0xce   :  { %1666 = vmatpush2.bf16.msra.mxu1 %v3160_v2  ;;  %1589 = vmatprep.subr.bf16.mxu0 %v3171_v5  ;;  %v3255_v2 = vld [vmem:[#allocation5 + $0x36c] ss:$16 sps:$4 sm:$0xff]  }
  0xcf   :  { %1667 = vmatprep.subr.bf16.mxu1 %v3168_v4  ;;  %v3253_v4 = vld [vmem:[#allocation5 + $0x368] ss:$16 sps:$4 sm:$0xff]   ;;  %v3258_v5 = vld [vmem:[#allocation5 + $0x58c] ss:$16 sps:$4 sm:$0xff]  }
  0xd1   :  { %1590 = vmatpush2.bf16.msra.mxu0 %v3169_v7  ;;  %v3256_v7 = vld [vmem:[#allocation5 + $0x588] ss:$16 sps:$4 sm:$0xff]  }
  0xd2   :  { %1668 = vmatpush2.bf16.msra.mxu1 %v3166_v6  ;;  %1591 = vmatprep.subr.bf16.mxu0 %v3177_v11  ;;  %v3261_v6 = vld [vmem:[#allocation5 + $0x34c] ss:$16 sps:$4 sm:$0xff]  }
  0xd3   :  { %1669 = vmatprep.subr.bf16.mxu1 %v3174_v10  ;;  %v3259_v10 = vld [vmem:[#allocation5 + $0x348] ss:$16 sps:$4 sm:$0xff]   ;;  %v3264_v11 = vld [vmem:[#allocation5 + $0x56c] ss:$16 sps:$4 sm:$0xff]  }
  0xd5   :  { %1592 = vmatpush2.bf16.msra.mxu0 %v3175_v13  ;;  %v3262_v13 = vld [vmem:[#allocation5 + $0x568] ss:$16 sps:$4 sm:$0xff]  }
  0xd6   :  { %1670 = vmatpush2.bf16.msra.mxu1 %v3172_v12  ;;  %1684 = vmatprep.subr.bf16.mxu0 %v3183_v17  ;;  %v3267_v12 = vld [vmem:[#allocation5 + $0x32c] ss:$16 sps:$4 sm:$0xff]  }
  0xd7   :  { %1671 = vmatprep.subr.bf16.mxu1 %v3180_v14  ;;  %v3265_v14 = vld [vmem:[#allocation5 + $0x328] ss:$16 sps:$4 sm:$0xff]   ;;  %v3273_v17 = vld [vmem:[#allocation5 + $0x30c] ss:$16 sps:$4 sm:$0xff]  }
  0xd8   :  { %1594 = vmatmul.mubr.bf16.vlgmr.msra.gmra.mxu0 %v3713_v20 }
  0xd9   :  { %1685 = vmatpush1.bf16.msra.mxu0 %v3181_v21  ;;  %1716 = vmatprep.mubr.bf16.mxu0 %v3694_v52  ;;  %v3205_v52 = vld [vmem:[#allocation5 + $0x268] ss:$16 sps:$4 sm:$0xff]  }
  0xda   :  { %1672 = vmatpush2.bf16.msra.mxu1 %v3178_v18  ;;  %1686 = vmatprep.subr.bf16.mxu0 %v3189_v23  ;;  %v3268_v18 = vld [vmem:[#allocation5 + $0x548] ss:$16 sps:$4 sm:$0xff]  }
  0xdb   :  { %1673 = vmatprep.subr.bf16.mxu1 %v3186_v22  ;;  %v3271_v21 = vld [vmem:[#allocation5 + $0x308] ss:$16 sps:$4 sm:$0xff]   ;;  %v3276_v22 = vld [vmem:[#allocation5 + $0x52c] ss:$16 sps:$4 sm:$0xff]  }
  0xdc   :  { %v3285_v23 = vld [vmem:[#allocation8 + $0x74] ss:$8 sps:$4 sm:$0xff]  }
  0xdd   :  { %1687 = vmatpush1.bf16.msra.mxu0 %v3187_v25  ;;  %v3283_v25 = vld [vmem:[#allocation8 + $0x70] ss:$8 sps:$4 sm:$0xff]  }
  0xde   :  { %1674 = vmatpush2.bf16.msra.mxu1 %v3184_v24  ;;  %1688 = vmatprep.subr.bf16.mxu0 %v3195_v27  ;;  %v3274_v24 = vld [vmem:[#allocation5 + $0x528] ss:$16 sps:$4 sm:$0xff]  }
  0xdf   :  { %1725 = vmatprep.subr.bf16.mxu1 %v3192_v26  ;;  %v3279_v26 = vld [vmem:[#allocation5 + $0x50c] ss:$16 sps:$4 sm:$0xff]   ;;  %v3288_v27 = vld [vmem:[#allocation8 + $0x64] ss:$8 sps:$4 sm:$0xff]  }
  0xe1   :  { %1676 = vmatmul.mubr.bf16.vlgmr.msra.gmra.mxu1 %v3698_v8  ;;  %1689 = vmatpush1.bf16.msra.mxu0 %v3193_v29  ;;  %v3211_v8 = vld [vmem:[#allocation5 + $0x248] ss:$16 sps:$4 sm:$0xff]   ;;  %v3286_v29 = vld [vmem:[#allocation8 + $0x60] ss:$8 sps:$4 sm:$0xff]  }
  0xe2   :  { %1726 = vmatpush1.bf16.msra.mxu1 %v3190_v28  ;;  %1690 = vmatprep.subr.bf16.mxu0 %v3201_v31  ;;  %v3277_v28 = vld [vmem:[#allocation5 + $0x508] ss:$16 sps:$4 sm:$0xff]  }
  0xe3   :  { %1727 = vmatprep.subr.bf16.mxu1 %v3198_v30  ;;  %1757 = vmatprep.mubr.bf16.mxu1 %v3710_v36  ;;  %v3222_v36 = vld [vmem:[#allocation5 + $0x44c] ss:$16 sps:$4 sm:$0xff]   ;;  %v3291_v31 = vld [vmem:[#allocation8 + $0x54] ss:$8 sps:$4 sm:$0xff]  }
  0xe4   :  { %v3282_v30 = vld [vmem:[#allocation5 + $0x60c] ss:$16 sps:$4 sm:$0xff]  }
  0xe5   :  { %1691 = vmatpush1.bf16.msra.mxu0 %v3199_v33  ;;  %v3289_v33 = vld [vmem:[#allocation8 + $0x50] ss:$8 sps:$4 sm:$0xff]  }
  0xe6   :  { %1728 = vmatpush1.bf16.msra.mxu1 %v3196_v32  ;;  %1692 = vmatprep.subr.bf16.mxu0 %v3207_v35  ;;  %v3280_v32 = vld [vmem:[#allocation5 + $0x608] ss:$16 sps:$4 sm:$0xff]  }
  0xe7   :  { %1729 = vmatprep.subr.bf16.mxu1 %v3204_v34  ;;  %v3294_v34 = vld [vmem:[#allocation8 + $0x44] ss:$8 sps:$4 sm:$0xff]   ;;  %v3297_v35 = vld [vmem:[#allocation8 + $0x34] ss:$8 sps:$4 sm:$0xff]  }
  0xe9   :  { %1693 = vmatpush1.bf16.msra.mxu0 %v3205_v52  ;;  %v3331_v52 = vld [vmem:[#allocation8 + $0x170] ss:$8 sps:$4 sm:$0xff]  }
  0xea   :  { %1730 = vmatpush1.bf16.msra.mxu1 %v3202_v37  ;;  %1694 = vmatprep.subr.bf16.mxu0 %v3213_v39  ;;  %v3295_v37 = vld [vmem:[#allocation8 + $0x30] ss:$8 sps:$4 sm:$0xff]   ;;  %v3300_v39 = vld [vmem:[#allocation8 + $0x24] ss:$8 sps:$4 sm:$0xff]  }
  0xeb   :  { %1731 = vmatprep.subr.bf16.mxu1 %v3210_v38  ;;  %v3333_v38 = vld [vmem:[#allocation8 + $0x174] ss:$8 sps:$4 sm:$0xff]  }
  0xed   :  { %1695 = vmatpush1.bf16.msra.mxu0 %v3211_v8  ;;  %v3298_v8 = vld [vmem:[#allocation8 + $0x20] ss:$8 sps:$4 sm:$0xff]  }
  0xee   :  { %1732 = vmatpush1.bf16.msra.mxu1 %v3208_v40  ;;  %1696 = vmatprep.subr.bf16.mxu0 %v3219_v42  ;;  %v3336_v40 = vld [vmem:[#allocation8 + $0x164] ss:$8 sps:$4 sm:$0xff]   ;;  %v3337_v42 = vld [vmem:[#allocation8 + $0x150] ss:$8 sps:$4 sm:$0xff]  }
  0xef   :  { %1733 = vmatprep.subr.bf16.mxu1 %v3216_v41  ;;  %v3303_v41 = vld [vmem:[#allocation8 + $0x14] ss:$8 sps:$4 sm:$0xff]  }
  0xf1   :  { %1697 = vmatpush1.bf16.msra.mxu0 %v3217_v44  ;;  %v3342_v44 = vld [vmem:[#allocation8 + $0x144] ss:$8 sps:$4 sm:$0xff]  }
  0xf2   :  { %1734 = vmatpush1.bf16.msra.mxu1 %v3214_v43  ;;  %1698 = vmatprep.subr.bf16.mxu0 %v3225_v45  ;;  %v3301_v43 = vld [vmem:[#allocation8 + $0x10] ss:$8 sps:$4 sm:$0xff]   ;;  %v3340_v45 = vld [vmem:[#allocation8 + $0x140] ss:$8 sps:$4 sm:$0xff]  }
  0xf3   :  { %1735 = vmatprep.subr.bf16.mxu1 %v3222_v36  ;;  %v3306_v36 = vld [vmem:[#allocation8 + $0x4] ss:$8 sps:$4 sm:$0xff]  }
  0xf5   :  { %1699 = vmatpush1.bf16.msra.mxu0 %v3223_v47  ;;  %v3309_v47 = vld [vmem:[#allocation8 + $0xf4] ss:$8 sps:$4 sm:$0xff]  }
  0xf6   :  { %1736 = vmatpush1.bf16.msra.mxu1 %v3220_v46  ;;  %1700 = vmatprep.subr.bf16.mxu0 %v3231_v49  ;;  %v3345_v46 = vld [vmem:[#allocation8 + $0x134] ss:$8 sps:$4 sm:$0xff]   ;;  %v3307_v49 = vld [vmem:[#allocation8 + $0xf0] ss:$8 sps:$4 sm:$0xff]  }
  0xf7   :  { %1737 = vmatprep.subr.bf16.mxu1 %v3228_v48  ;;  %v3343_v48 = vld [vmem:[#allocation8 + $0x130] ss:$8 sps:$4 sm:$0xff]  }
  0xf9   :  { %1701 = vmatpush2.bf16.msra.mxu0 %v3229_v51  ;;  %v3312_v51 = vld [vmem:[#allocation8 + $0xe4] ss:$8 sps:$4 sm:$0xff]  }
  0xfa   :  { %1738 = vmatpush1.bf16.msra.mxu1 %v3226_v50  ;;  %1702 = vmatprep.subr.bf16.mxu0 %v3237_v54  ;;  %v3348_v50 = vld [vmem:[#allocation8 + $0x124] ss:$8 sps:$4 sm:$0xff]   ;;  %v3310_v54 = vld [vmem:[#allocation8 + $0xe0] ss:$8 sps:$4 sm:$0xff]  }
  0xfb   :  { %1739 = vmatprep.subr.bf16.mxu1 %v3234_v53  ;;  %v3346_v53 = vld [vmem:[#allocation8 + $0x120] ss:$8 sps:$4 sm:$0xff]  }
  0xfd   :  { %1703 = vmatpush2.bf16.msra.mxu0 %v3235_v56  ;;  %v3315_v56 = vld [vmem:[#allocation8 + $0xd4] ss:$8 sps:$4 sm:$0xff]  }
  0xfe   :  { %1740 = vmatpush1.bf16.msra.mxu1 %v3232_v55  ;;  %1704 = vmatprep.subr.bf16.mxu0 %v3243_v58  ;;  %v3351_v55 = vld [vmem:[#allocation8 + $0x114] ss:$8 sps:$4 sm:$0xff]   ;;  %v3313_v58 = vld [vmem:[#allocation8 + $0xd0] ss:$8 sps:$4 sm:$0xff]  }
  0xff   :  { %1741 = vmatprep.subr.bf16.mxu1 %v3240_v57  ;;  %v3349_v57 = vld [vmem:[#allocation8 + $0x110] ss:$8 sps:$4 sm:$0xff]  }
 0x101   :  { %1705 = vmatpush2.bf16.msra.mxu0 %v3241_v60  ;;  %v3318_v60 = vld [vmem:[#allocation8 + $0xc4] ss:$8 sps:$4 sm:$0xff]  }
 0x102   :  { %1742 = vmatpush2.bf16.msra.mxu1 %v3238_v59  ;;  %1706 = vmatprep.subr.bf16.mxu0 %v3249_v62  ;;  %v3354_v59 = vld [vmem:[#allocation8 + $0x104] ss:$8 sps:$4 sm:$0xff]   ;;  %v3316_v62 = vld [vmem:[#allocation8 + $0xc0] ss:$8 sps:$4 sm:$0xff]  }
 0x103   :  { %1743 = vmatprep.subr.bf16.mxu1 %v3246_v61  ;;  %v3352_v61 = vld [vmem:[#allocation8 + $0x100] ss:$8 sps:$4 sm:$0xff]  }
 0x105   :  { %1707 = vmatpush2.bf16.msra.mxu0 %v3247_v0  ;;  %v3321_v0 = vld [vmem:[#allocation8 + $0xb4] ss:$8 sps:$4 sm:$0xff]  }
 0x106   :  { %1744 = vmatpush2.bf16.msra.mxu1 %v3244_v63  ;;  %1708 = vmatprep.subr.bf16.mxu0 %v3255_v2  ;;  %v3357_v63 = vld [vmem:[#allocation8 + $0x1f4] ss:$8 sps:$4 sm:$0xff]   ;;  %v3319_v2 = vld [vmem:[#allocation8 + $0xb0] ss:$8 sps:$4 sm:$0xff]  }
 0x107   :  { %1745 = vmatprep.subr.bf16.mxu1 %v3252_v1  ;;  %v3355_v1 = vld [vmem:[#allocation8 + $0x1f0] ss:$8 sps:$4 sm:$0xff]  }
 0x109   :  { %1709 = vmatpush2.bf16.msra.mxu0 %v3253_v4  ;;  %v3324_v4 = vld [vmem:[#allocation8 + $0xa4] ss:$8 sps:$4 sm:$0xff]  }
 0x10a   :  { %1746 = vmatpush2.bf16.msra.mxu1 %v3250_v3  ;;  %1710 = vmatprep.subr.bf16.mxu0 %v3261_v6  ;;  %v3360_v3 = vld [vmem:[#allocation8 + $0x1e4] ss:$8 sps:$4 sm:$0xff]   ;;  %v3322_v6 = vld [vmem:[#allocation8 + $0xa0] ss:$8 sps:$4 sm:$0xff]  }
 0x10b   :  { %1747 = vmatprep.subr.bf16.mxu1 %v3258_v5  ;;  %v3358_v5 = vld [vmem:[#allocation8 + $0x1e0] ss:$8 sps:$4 sm:$0xff]  }
 0x10d   :  { %1711 = vmatpush2.bf16.msra.mxu0 %v3259_v10  ;;  %v3325_v10 = vld [vmem:[#allocation8 + $0x90] ss:$8 sps:$4 sm:$0xff]  }
 0x10e   :  { %1748 = vmatpush2.bf16.msra.mxu1 %v3256_v7  ;;  %1712 = vmatprep.subr.bf16.mxu0 %v3267_v12  ;;  %v3327_v7 = vld [vmem:[#allocation8 + $0x94] ss:$8 sps:$4 sm:$0xff]   ;;  %v3328_v12 = vld [vmem:[#allocation8 + $0x80] ss:$8 sps:$4 sm:$0xff]  }
 0x10f   :  { %1749 = vmatprep.subr.bf16.mxu1 %v3264_v11  ;;  %v3330_v11 = vld [vmem:[#allocation8 + $0x84] ss:$8 sps:$4 sm:$0xff]  }
 0x111   :  { %1713 = vmatpush2.bf16.msra.mxu0 %v3265_v14 }
 0x112   :  { %1750 = vmatpush2.bf16.msra.mxu1 %v3262_v13  ;;  %1714 = vmatprep.subr.bf16.mxu0 %v3273_v17  ;;  %v3361_v17 = vld [vmem:[#allocation8 + $0x1d0] ss:$8 sps:$4 sm:$0xff]  }
 0x113   :  { %1751 = vmatprep.subr.bf16.mxu1 %v3270_v15  ;;  %v3363_v15 = vld [vmem:[#allocation8 + $0x1d4] ss:$8 sps:$4 sm:$0xff]  }
 0x115   :  { %1715 = vmatpush2.bf16.msra.mxu0 %v3271_v21 }
 0x116   :  { %1752 = vmatpush2.bf16.msra.mxu1 %v3268_v18  ;;  %2146 = vmatprep.subr.bf16.mxu0 %v3285_v23  ;;  %v3366_v23 = vld [vmem:[#allocation8 + $0x1c4] ss:$8 sps:$4 sm:$0xff]  }
 0x117   :  { %1753 = vmatprep.subr.bf16.mxu1 %v3276_v22  ;;  %v3364_v22 = vld [vmem:[#allocation8 + $0x1c0] ss:$8 sps:$4 sm:$0xff]  }
 0x118   :  { %1717 = vmatmul.mubr.bf16.vlgmr.msra.gmra.mxu0 %v3700_v9  ;;  %v3292_v9 = vld [vmem:[#allocation8 + $0x40] ss:$8 sps:$4 sm:$0xff]  }
 0x119   :  { %2147 = vmatpush1.bf16.msra.mxu0 %v3283_v25 }
 0x11a   :  { %1754 = vmatpush2.bf16.msra.mxu1 %v3274_v24  ;;  %2148 = vmatprep.subr.bf16.mxu0 %v3288_v27 }
 0x11b   :  { %1755 = vmatprep.subr.bf16.mxu1 %v3279_v26 }
 0x11d   :  { %2149 = vmatpush1.bf16.msra.mxu0 %v3286_v29  ;;  %v3369_v29 = vld [vmem:[#allocation8 + $0x1b4] ss:$8 sps:$4 sm:$0xff]  }
 0x11e   :  { %1756 = vmatpush2.bf16.msra.mxu1 %v3277_v28  ;;  %2150 = vmatprep.subr.bf16.mxu0 %v3291_v31 }
 0x11f   :  { %1780 = vmatprep.subr.bf16.mxu1 %v3282_v30  ;;  %v3367_v30 = vld [vmem:[#allocation8 + $0x1b0] ss:$8 sps:$4 sm:$0xff]  }
 0x121   :  { %1758 = vmatmul.mubr.bf16.vlgmr.msra.gmra.mxu1 %v3713_v20  ;;  %2151 = vmatpush1.bf16.msra.mxu0 %v3289_v33  ;;  %v3334_v20 = vld [vmem:[#allocation8 + $0x160] ss:$8 sps:$4 sm:$0xff]   ;;  %v3372_v33 = vld [vmem:[#allocation8 + $0x1a4] ss:$8 sps:$4 sm:$0xff]  }
 0x122   :  { %1781 = vmatpush1.bf16.msra.mxu1 %v3280_v32  ;;  %1798 = vmatprep.mubr.bf16.mxu1 %v3598_v16  ;;  %v3339_v16 = vld [vmem:[#allocation8 + $0x154] ss:$8 sps:$4 sm:$0xff]  }
 0x123   :  { %2152 = vmatprep.subr.bf16.mxu0 %v3294_v34  ;;  %2187 = vmatprep.subr.bf16.mxu1 %v3333_v38  ;;  %v3370_v34 = vld [vmem:[#allocation8 + $0x1a0] ss:$8 sps:$4 sm:$0xff]  }
 0x124   :  { %v3376_v38 = vld [vmem:[#allocation8 + $0x180] ss:$8 sps:$4 sm:$0xff]  }
 0x125   :  { %2153 = vmatpush1.bf16.msra.mxu0 %v3292_v9 }
 0x126   :  { %2154 = vmatprep.subr.bf16.mxu0 %v3297_v35  ;;  %v3375_v35 = vld [vmem:[#allocation8 + $0x194] ss:$8 sps:$4 sm:$0xff]  }
 0x129   :  { %2792 = vmatmul.mubr.msk.bf16.vlgmr.msra.gmra.mxu1 %vm1475_vm0, %v3705_v19  ;;  %2155 = vmatpush1.bf16.msra.mxu0 %v3295_v37  ;;  %v3304_v19 = vld [vmem:[#allocation8] ss:$8 sps:$4 sm:$0xff]   ;;  %v3373_v37 = vld [vmem:[#allocation8 + $0x190] ss:$8 sps:$4 sm:$0xff]  }
 0x12a   :  { %2188 = vmatpush1.bf16.msra.mxu1 %v3331_v52  ;;  %2156 = vmatprep.subr.bf16.mxu0 %v3300_v39  ;;  %v3378_v52 = vld [vmem:[#allocation8 + $0x184] ss:$8 sps:$4 sm:$0xff]   ;;  %v475_v39 = vlaneseq }
 0x12b   :  { %2189 = vmatprep.subr.bf16.mxu1 %v3336_v40 }
 0x12c   :  { %v3724_v40 = vshrl.u32 %v475_v39, 7  ;;  %v3388_v39 = vld [vmem:[#allocation10 + $0x18] sm:$0xff]  }
 0x12d   :  { %2157 = vmatpush1.bf16.msra.mxu0 %v3298_v8  ;;  %v455_v8 = vld [vmem:[#allocation7] sm:$0xf] }
 0x12e   :  { %2190 = vmatpush1.bf16.msra.mxu1 %v3334_v20  ;;  %2158 = vmatprep.subr.bf16.mxu0 %v3303_v41  ;;  %v477_v20 = vsub.s32 0, %v3724_v40 }
 0x12f   :  { %2191 = vmatprep.subr.bf16.mxu1 %v3339_v16  ;;  %v481_v16 = vsub.s32 1, %v3724_v40 }
 0x130   :  { %v478_v41 = vrot.slane %v455_v8, %v477_v20 }
 0x131   :  { %2159 = vmatpush1.bf16.msra.mxu0 %v3301_v43 }
 0x132   :  { %2192 = vmatpush1.bf16.msra.mxu1 %v3337_v42  ;;  %2160 = vmatprep.subr.bf16.mxu0 %v3306_v36  ;;  %v482_v42 = vrot.slane %v455_v8, %v481_v16 }
 0x133   :  { %2193 = vmatprep.subr.bf16.mxu1 %v3342_v44 }
 0x135   :  { %2161 = vmatpush1.bf16.msra.mxu0 %v3304_v19 }
 0x136   :  { %2194 = vmatpush1.bf16.msra.mxu1 %v3340_v45  ;;  %2162 = vmatprep.subr.bf16.mxu0 %v3309_v47 }
 0x137   :  { %2195 = vmatprep.subr.bf16.mxu1 %v3345_v46 }
 0x139   :  { %2163 = vmatpush2.bf16.msra.mxu0 %v3307_v49 }
 0x13a   :  { %2196 = vmatpush1.bf16.msra.mxu1 %v3343_v48  ;;  %2164 = vmatprep.subr.bf16.mxu0 %v3312_v51 }
 0x13b   :  { %2197 = vmatprep.subr.bf16.mxu1 %v3348_v50 }
 0x13d   :  { %2165 = vmatpush2.bf16.msra.mxu0 %v3310_v54 }
 0x13e   :  { %2198 = vmatpush1.bf16.msra.mxu1 %v3346_v53  ;;  %2166 = vmatprep.subr.bf16.mxu0 %v3315_v56 }
 0x13f   :  { %2199 = vmatprep.subr.bf16.mxu1 %v3351_v55 }
 0x141   :  { %2167 = vmatpush2.bf16.msra.mxu0 %v3313_v58 }
 0x142   :  { %2200 = vmatpush1.bf16.msra.mxu1 %v3349_v57  ;;  %2168 = vmatprep.subr.bf16.mxu0 %v3318_v60 }
 0x143   :  { %2201 = vmatprep.subr.bf16.mxu1 %v3354_v59 }
 0x145   :  { %2169 = vmatpush2.bf16.msra.mxu0 %v3316_v62 }
 0x146   :  { %2202 = vmatpush1.bf16.msra.mxu1 %v3352_v61  ;;  %2170 = vmatprep.subr.bf16.mxu0 %v3321_v0  ;;  %v485_v0 = vsub.s32 2, %v3724_v40 }
 0x147   :  { %2203 = vmatprep.subr.bf16.mxu1 %v3357_v63 }
 0x149   :  { %2171 = vmatpush2.bf16.msra.mxu0 %v3319_v2  ;;  %v489_v2 = vsub.s32 3, %v3724_v40  ;;  %v3401_v40 = vld [vmem:[#allocation11 + $0x8] sm:$0xff]  }
 0x14a   :  { %2204 = vmatpush2.bf16.msra.mxu1 %v3355_v1  ;;  %2172 = vmatprep.subr.bf16.mxu0 %v3324_v4  ;;  %v486_v4 = vrot.slane %v455_v8, %v485_v0 }
 0x14b   :  { %2205 = vmatprep.subr.bf16.mxu1 %v3360_v3 }
 0x14d   :  { %2173 = vmatpush2.bf16.msra.mxu0 %v3322_v6  ;;  %v490_v6 = vrot.slane %v455_v8, %v489_v2  ;;  %v3389_v8 = vld [vmem:[#allocation10 + $0x50] sm:$0xff]  }
 0x14e   :  { %2206 = vmatpush2.bf16.msra.mxu1 %v3358_v5  ;;  %2174 = vmatprep.subr.bf16.mxu0 %v3327_v7 }
 0x14f   :  { %2207 = vmatprep.subr.bf16.mxu1 %v3363_v15 }
 0x151   :  { %2175 = vmatpush2.bf16.msra.mxu0 %v3325_v10 }
 0x152   :  { %2176 = vmatprep.subr.bf16.mxu0 %v3330_v11  ;;  %2208 = vmatpush2.bf16.msra.mxu1 %v3361_v17 }
 0x153   :  { %2209 = vmatprep.subr.bf16.mxu1 %v3366_v23 }
 0x155   :  { %2177 = vmatpush2.bf16.msra.mxu0 %v3328_v12 }
 0x156   :  { %2210 = vmatpush2.bf16.msra.mxu1 %v3364_v22 }
 0x157   :  { %2211 = vmatprep.subr.bf16.mxu1 %v3369_v29 }
 0x158   :  { %v1513_v13 = vpop.f32.mrf.mxu0 }
 0x159   :  { %v1554_v14 = vpop.f32.mrf.mxu1  ;;  %v1514_v43 = vadd.f32 %v1513_v13, %v478_v41  ;;  %v3390_v41 = vld [vmem:[#allocation10 + $0x10] sm:$0xff]  }
 0x15a   :  { %v1515_v18 = vpop.f32.mrf.mxu0  ;;  %2212 = vmatpush2.bf16.msra.mxu1 %v3367_v30 }
 0x15b   :  { %v1556_v21 = vpop.f32.mrf.mxu1  ;;  %2213 = vmatprep.subr.bf16.mxu1 %v3372_v33  ;;  %v1516_v44 = vadd.f32 %v1515_v18, %v482_v42  ;;  %v1555_v36 = vadd.f32 %v1554_v14, %v1514_v43  ;;  %v3383_v33 = vld [vmem:[#allocation10 + $0x68] sm:$0xff]  }
 0x15c   :  { %v1517_v25 = vpop.f32.mrf.mxu0  ;;  %v3391_v42 = vld [vmem:[#allocation10 + $0x48] sm:$0xff]  }
 0x15d   :  { %v1558_v24 = vpop.f32.mrf.mxu1  ;;  %v1557_v19 = vadd.f32 %v1556_v21, %v1516_v44  ;;  %v3380_v25 = vld [vmem:[#allocation10 + $0x38] sm:$0xff]   ;;  %v3392_v43 = vld [vmem:[#allocation10 + $0x8] sm:$0xff]   ;;  %v3393_v44 = vld [vmem:[#allocation10 + $0x40] sm:$0xff]  }
 0x15e   :  { %v1518_v27 = vpop.f32.mrf.mxu0  ;;  %2214 = vmatpush2.bf16.msra.mxu1 %v3370_v34  ;;  %v3379_v24 = vld [vmem:[#allocation10 + $0x78] sm:$0xff]  }
 0x15f   :  { %v1559_v26 = vpop.f32.mrf.mxu1  ;;  %2215 = vmatprep.subr.bf16.mxu1 %v3375_v35  ;;  %2892 = vmatprep.subr.bf16.mxu0 %v3379_v24  ;;  %v3384_v35 = vld [vmem:[#allocation10 + $0x28] sm:$0xff]  }
 0x160   :  { %v3381_v26 = vld [vmem:[#allocation10 + $0x70] sm:$0xff]  }
 0x161   :  { %v1636_v28 = vpop.f32.mrf.mxu1 }
 0x162   :  { %2216 = vmatpush2.bf16.msra.mxu1 %v3373_v37  ;;  %v3385_v37 = vld [vmem:[#allocation10 + $0x60] sm:$0xff]  }
 0x163   :  { %v1638_v31 = vpop.f32.mrf.mxu1  ;;  %2217 = vmatprep.subr.bf16.mxu1 %v3378_v52  ;;  %v3386_v52 = vld [vmem:[#allocation10 + $0x20] sm:$0xff]  }
 0x165   :  { %v1640_v32 = vpop.f32.mrf.mxu1 }
 0x166   :  { %2218 = vmatpush2.bf16.msra.mxu1 %v3376_v38  ;;  %v3387_v38 = vld [vmem:[#allocation10 + $0x58] sm:$0xff]  }
 0x167   :  { %v1641_v9 = vpop.f32.mrf.mxu1 }
 0x198   :  { %v1595_v45 = vpop.f32.mrf.mxu0 }
 0x199   :  { %v1596_v46 = vadd.f32 %v1595_v45, %v1555_v36  ;;  %v3394_v36 = vld [vmem:[#allocation10] sm:$0xff]   ;;  %v3395_v45 = vld [vmem:[#allocation11 + $0x38] sm:$0xff]  }
 0x19a   :  { %v1597_v47 = vpop.f32.mrf.mxu0 }
 0x19b   :  { %v1637_v48 = vadd.f32 %v1636_v28, %v1596_v46  ;;  %v1598_v49 = vadd.f32 %v1597_v47, %v1557_v19  ;;  %v3599_v19 = vmov 0.0   ;;  %v3396_v46 = vld [vmem:[#allocation11 + $0x30] sm:$0xff]   ;;  %v3397_v47 = vld [vmem:[#allocation11 + $0x28] sm:$0xff]  }
 0x19c   :  { %v1599_v50 = vpop.f32.mrf.mxu0  ;;  %2932 = vmatprep.subr.bf16.mxu1 %v3599_v19 }
 0x19d   :  { %v1639_v51 = vadd.f32 %v1638_v31, %v1598_v49  ;;  %v1807_v53 = vmax.f32 %v1637_v48, 0.0  ;;  %v3382_v31 = vld [vmem:[#allocation10 + $0x30] sm:$0xff]   ;;  %v3398_v48 = vld [vmem:[#allocation11 + $0x20] sm:$0xff]   ;;  %v3399_v49 = vld [vmem:[#allocation11 + $0x18] sm:$0xff]  }
 0x19e   :  { %v1600_v54 = vpop.f32.mrf.mxu0 }
 0x19f   :  { %v1808_v55 = vmax.f32 %v1639_v51, 0.0  ;;  %v1811_v58 = vpack.c.bf16 %v1807_v53, %v1807_v53 }
 0x1a1   :  { %v1677_v56 = vpop.f32.mrf.mxu1  ;;  %v1812_v57 = vpack.c.bf16 %v1808_v55, %v1808_v55  ;;  %v456_v55 = vld [vmem:[%s3775_s4] sm:$0x3] }
 0x1a2   :  { %v1678_v10 = vadd.f32 %v1677_v56, %v486_v4  ;;  %v1819_v56 = vrot.slane %v456_v55, %v477_v20  ;;  %v3402_v20 = vld [vmem:[#allocation11] sm:$0xff]  }
 0x1a3   :  { %v1679_v59 = vpop.f32.mrf.mxu1  ;;  %2178 = vmatprep.mubr.bf16.mxu0 %v1812_v57  ;;  %v1823_v57 = vrot.slane %v456_v55, %v481_v16  ;;  %v3403_v16 = vld [vmem:[#allocation13 + $0x38] sm:$0xff]  }
 0x1a4   :  { %2179 = vmatmul.mubr.bf16.vlgmr.msra.gmra.mxu0 %v1811_v58  ;;  %v1680_v12 = vadd.f32 %v1679_v59, %v490_v6  ;;  %v3400_v6 = vld [vmem:[#allocation11 + $0x10] sm:$0xff]  }
 0x1a5   :  { %v1681_v60 = vpop.f32.mrf.mxu1  ;;  %2893 = vmatpush3.bf16.msra.mxu0 %v3380_v25 }
 0x1a6   :  { %2894 = vmatprep.subr.bf16.mxu0 %v3381_v26  ;;  %v3409_v26 = vld [vmem:[#allocation13 + $0x8] sm:$0xff]  }
 0x1a7   :  { %v1682_v61 = vpop.f32.mrf.mxu1 }
 0x1a9   :  { %2895 = vmatpush3.bf16.msra.mxu0 %v3382_v31 }
 0x1aa   :  { %2896 = vmatprep.subr.bf16.mxu0 %v3383_v33 }
 0x1ad   :  { %2897 = vmatpush3.bf16.msra.mxu0 %v3384_v35  ;;  %v2883_v35 = vld [vmem:[%s3781_s10] ss:$0 sm:$0xff] }
 0x1ae   :  { %2898 = vmatprep.subr.bf16.mxu0 %v3385_v37 }
 0x1b1   :  { %2899 = vmatpush3.bf16.msra.mxu0 %v3386_v52 }
 0x1b2   :  { %2900 = vmatprep.subr.bf16.mxu0 %v3387_v38 }
 0x1b5   :  { %2901 = vmatpush3.bf16.msra.mxu0 %v3388_v39 }
 0x1b6   :  { %2902 = vmatprep.subr.bf16.mxu0 %v3389_v8 }
 0x1b9   :  { %2903 = vmatpush3.bf16.msra.mxu0 %v3390_v41 }
 0x1ba   :  { %2904 = vmatprep.subr.bf16.mxu0 %v3391_v42 }
 0x1bd   :  { %2905 = vmatpush3.bf16.msra.mxu0 %v3392_v43 }
 0x1be   :  { %2906 = vmatprep.subr.bf16.mxu0 %v3393_v44 }
 0x1c1   :  { %2907 = vmatpush3.bf16.msra.mxu0 %v3394_v36 }
 0x1c2   :  { %2952 = vmatprep.subr.bf16.mxu0 %v3599_v19 }
 0x1d8   :  { %v1718_v62 = vpop.f32.mrf.mxu0 }
 0x1d9   :  { %v1719_v13 = vadd.f32 %v1718_v62, %v1678_v10  ;;  %v3405_v10 = vld [vmem:[#allocation13 + $0x28] sm:$0xff]  }
 0x1da   :  { %v1720_v63 = vpop.f32.mrf.mxu0 }
 0x1db   :  { %v1721_v15 = vadd.f32 %v1720_v63, %v1680_v12  ;;  %v3407_v12 = vld [vmem:[#allocation13 + $0x18] sm:$0xff]  }
 0x1dc   :  { %v1722_v1 = vpop.f32.mrf.mxu0 }
 0x1de   :  { %v1723_v3 = vpop.f32.mrf.mxu0 }
 0x1e1   :  { %v1759_v5 = vpop.f32.mrf.mxu1 }
 0x1e2   :  { %v1760_v17 = vadd.f32 %v1759_v5, %v1719_v13  ;;  %v3408_v13 = vld [vmem:[#allocation13 + $0x10] sm:$0xff]  }
 0x1e3   :  { %v1761_v7 = vpop.f32.mrf.mxu1 }
 0x1e4   :  { %v1762_v21 = vadd.f32 %v1761_v7, %v1721_v15  ;;  %v3404_v7 = vld [vmem:[#allocation13 + $0x30] sm:$0xff]   ;;  %v2857_v15 = vld [vmem:[%s3777_s6] ss:$0 sm:$0xff] }
 0x1e5   :  { %v1763_v11 = vpop.f32.mrf.mxu1 }
 0x1e6   :  { %v3406_v11 = vld [vmem:[#allocation13 + $0x20] sm:$0xff]  }
 0x1e7   :  { %v1764_v14 = vpop.f32.mrf.mxu1 }
 0x1e9   :  { %v1800_v18 = vpop.f32.mrf.mxu1 }
 0x1ea   :  { %v1801_v22 = vadd.f32 %v1800_v18, %v1760_v17 }
 0x1eb   :  { %v1802_v23 = vpop.f32.mrf.mxu1 }
 0x1ec   :  { %v1803_v27 = vadd.f32 %v1802_v23, %v1762_v21  ;;  %v1809_v28 = vmax.f32 %v1801_v22, 0.0 }
 0x1ed   :  { %v1804_v29 = vpop.f32.mrf.mxu1 }
 0x1ee   :  { %v1810_v30 = vmax.f32 %v1803_v27, 0.0  ;;  %v1813_v9 = vpack.c.bf16 %v1809_v28, %v1809_v28  ;;  %v3410_v27 = vld [vmem:[#allocation13] sm:$0xff]  }
 0x1ef   :  { %v1805_v32 = vpop.f32.mrf.mxu1  ;;  %v2874_v28 = vld [vmem:[%s3779_s8] ss:$0 sm:$0xff]  ;;  %s3601_s8 = smov [#allocation14]  }
 0x1f0   :  { %v1814_v34 = vpack.c.bf16 %v1810_v30, %v1810_v30  ;;  %s2583_s18 = sshll.u32 %s3601_s8, 4  ;;  %s2584_s18 = int_to_ptr.vmem [resolvable:$true] %s2583_s18 }
 0x1f1   :  { %s3555_s10 = scalar_lea.vmem %s2584_s18, 128  ;;  %p3560_p8 = scmp.lt.s32.totalorder %s2584_s18, %s2584_s18 }
 0x1f2   :  { %2219 = vmatprep.mubr.bf16.mxu1 %v1814_v34  ;;  %p3556_p7 = scmp.ne.s32.totalorder %s2584_s18, %s3555_s10  ;;  %p3561_p9 = scmp.lt.s32.totalorder %s3555_s10, %s3555_s10 }
 0x1f3   :  { %2220 = vmatmul.mubr.bf16.vlgmr.msra.gmra.mxu1 %v1813_v9 }
 0x1f4   :  { %2933 = vmatpush3.bf16.msra.mxu1 %v3395_v45  ;;  %2948 = vmatprep.mubr.msk.bf16.mxu1 %vm3600_vm1, %v3599_v19  ;;  %p3562_p10 = por %p3561_p9, %p3560_p8 }
 0x1f5   :  { %2934 = vmatprep.subr.bf16.mxu1 %v3599_v19 }
 0x1f6   :  { %p3563_p11 = pnand %p3562_p10, %p3556_p7 }
 0x1f8   :  { %2935 = vmatpush3.bf16.msra.mxu1 %v3396_v46 }
 0x1f9   :  { %2936 = vmatprep.subr.bf16.mxu1 %v3599_v19 }
 0x1fc   :  { %2937 = vmatpush3.bf16.msra.mxu1 %v3397_v47 }
 0x1fd   :  { %2938 = vmatprep.subr.bf16.mxu1 %v3599_v19 }
 0x200   :  { %2939 = vmatpush3.bf16.msra.mxu1 %v3398_v48 }
 0x201   :  { %2940 = vmatprep.subr.bf16.mxu1 %v3599_v19 }
 0x204   :  { %2941 = vmatpush3.bf16.msra.mxu1 %v3399_v49 }
 0x205   :  { %2942 = vmatprep.subr.bf16.mxu1 %v3599_v19 }
 0x208   :  { %2943 = vmatpush3.bf16.msra.mxu1 %v3400_v6 }
 0x209   :  { %2944 = vmatprep.subr.bf16.mxu1 %v3599_v19 }
 0x20c   :  { %2945 = vmatpush3.bf16.msra.mxu1 %v3401_v40 }
 0x20d   :  { %2946 = vmatprep.subr.bf16.mxu1 %v3599_v19 }
 0x210   :  { %2947 = vmatpush3.bf16.msra.mxu1 %v3402_v20 }
 0x264   :  { %v2180_v50 = vpop.f32.mrf.mxu0 }
 0x265   :  { %v2181_v58 = vadd.f32 %v2180_v50, %v1819_v56 }
 0x266   :  { %v2182_v51 = vpop.f32.mrf.mxu0 }
 0x267   :  { %v2183_v60 = vadd.f32 %v2182_v51, %v1823_v57 }
 0x268   :  { %v2184_v53 = vpop.f32.mrf.mxu0 }
 0x26a   :  { %v2185_v54 = vpop.f32.mrf.mxu0 }
 0x2b3   :  { %v2221_v59 = vpop.f32.mrf.mxu1 }
 0x2b4   :  { %v2222_v61 = vadd.f32 %v2221_v59, %v2181_v58 }
 0x2b5   :  { %v2223_v62 = vpop.f32.mrf.mxu1 }
 0x2b6   :  { %v2224_v63 = vadd.f32 %v2223_v62, %v2183_v60  ;;  %v2228_v0 = vmax.f32 %v2222_v61, 0.0 }
 0x2b7   :  { %v2225_v1 = vpop.f32.mrf.mxu1 }
 0x2b8   :  { %v2229_v2 = vmax.f32 %v2224_v63, 0.0  ;;  %v2230_v5 = vpack.c.bf16 %v2228_v0, %v2228_v0 }
 0x2b9   :  { %v2226_v3 = vpop.f32.mrf.mxu1 }
 0x2ba   :  { %v2231_v4 = vpack.c.bf16 %v2229_v2, %v2229_v2 }
 0x2bc   :  { %2366 = vmatprep.mubr.bf16.mxu0 %v2231_v4 }
 0x2bd   :  { %2367 = vmatmul.mubr.bf16.vlgmr.msra.gmra.mxu0 %v2230_v5 }
 0x2be   :  { %2968 = vmatprep.mubr.msk.bf16.mxu0 %vm3600_vm1, %v3599_v19  ;;  %2953 = vmatpush3.bf16.msra.mxu0 %v3403_v16 }
 0x2bf   :  { %2954 = vmatprep.subr.bf16.mxu0 %v3599_v19 }
 0x2c2   :  { %2955 = vmatpush3.bf16.msra.mxu0 %v3404_v7 }
 0x2c3   :  { %2956 = vmatprep.subr.bf16.mxu0 %v3599_v19 }
 0x2c6   :  { %2957 = vmatpush3.bf16.msra.mxu0 %v3405_v10 }
 0x2c7   :  { %2958 = vmatprep.subr.bf16.mxu0 %v3599_v19 }
 0x2ca   :  { %2959 = vmatpush3.bf16.msra.mxu0 %v3406_v11 }
 0x2cb   :  { %2960 = vmatprep.subr.bf16.mxu0 %v3599_v19 }
 0x2ce   :  { %2961 = vmatpush3.bf16.msra.mxu0 %v3407_v12 }
 0x2cf   :  { %2962 = vmatprep.subr.bf16.mxu0 %v3599_v19 }
 0x2d2   :  { %2963 = vmatpush3.bf16.msra.mxu0 %v3408_v13 }
 0x2d3   :  { %2964 = vmatprep.subr.bf16.mxu0 %v3599_v19 }
 0x2d6   :  { %2965 = vmatpush3.bf16.msra.mxu0 %v3409_v26 }
 0x2d7   :  { %2966 = vmatprep.subr.bf16.mxu0 %v3599_v19 }
 0x2da   :  { %2967 = vmatpush3.bf16.msra.mxu0 %v3410_v27 }
 0x37d   :  { %v2908_v14 = vpop.f32.mrf.mxu0 }
 0x37f   :  { %v2909_v17 = vpop.f32.mrf.mxu0 }
 0x380   :  { %v2910_v18 = vadd.f32 %v2909_v17, %v2908_v14 }
 0x381   :  { %v2911_v21 = vpop.f32.mrf.mxu0 }
 0x382   :  { %v2369_v22 = vadd.f32 %v2910_v18, %v2857_v15 }
 0x383   :  { %v2912_v23 = vpop.f32.mrf.mxu0 }
 0x384   :  { %v2374_v24 = vmax.f32 %v2369_v22, 0.0 }
 0x386   :  { %v2375_v25 = vpack.c.bf16 %v2374_v24, %v2374_v24 }
 0x388   :  { %2949 = vmatmul.mubr.bf16.vlgmr.msra.gmra.mxu1 %v2375_v25 }
 0x448   :  { %v2464_v29 = vpop.f32.mrf.mxu1 }
 0x449   :  { %v2465_v30 = vadd.f32 %v2874_v28, %v2464_v29 }
 0x44a   :  { %v2950_v31 = vpop.f32.mrf.mxu1 }
 0x44b   :  { %v2470_v32 = vmax.f32 %v2465_v30, 0.0 }
 0x44c   :  { %v2467_v33 = vpop.f32.mrf.mxu1 }
 0x44d   :  { %v2471_v34 = vpack.c.bf16 %v2470_v32, %v2470_v32 }
 0x44e   :  { %v2951_v9 = vpop.f32.mrf.mxu1 }
 0x44f   :  { %2969 = vmatmul.mubr.bf16.vlgmr.msra.gmra.mxu0 %v2471_v34 }
 0x50f   :  { %v2560_v37 = vpop.f32.mrf.mxu0 }
 0x510   :  { %v2561_v52 = vadd.f32 %v2883_v35, %v2560_v37 }
 0x511   :  { %v2970_v38 = vpop.f32.mrf.mxu0 }
 0x512   :  { %2566 = vmax.xlane.f32.xlu0 %v2561_v52 }
 0x513   :  { %v2563_v39 = vpop.f32.mrf.mxu0 }
 0x515   :  { %v2971_v8 = vpop.f32.mrf.mxu0 }
 0x59b   :  { %v2567_v41 = vpop.xlane.xlu0 %2566 }
 0x59c   :  { %v2568_v42 = vsub.f32 %v2561_v52, %v2567_v41 }
 0x59e   :  { %v2569_v43 = vmul.f32 1.442695, %v2568_v42 }
 0x5a0   :  { %3411 = vpow2.f32 %v2569_v43 }
 0x5ad   :  { %v3412_v44 = vpop.eup %3411 }
 0x5ae   :  { %2571 = vadd.xlane.f32.xlu0 %v3412_v44 }
 0x637   :  { %v2572_v36 = vpop.xlane.xlu0 %2571 }
 0x638   :  { %3413 = vlog2.f32 %v2572_v36 }
 0x645   :  { %v3414_v45 = vpop.eup %3413 }
 0x646   :  { %v2574_v19 = vmul.f32 0.6931472, %v3414_v45 }
 0x648   :  { %v2575_v46 = vsub.f32 %v2568_v42, %v2574_v19 }
 0x64a   :  { %2576 = vst [vmem:[#allocation14] sm:$0xff] %v2575_v46 }
 0x64b   :  { %3566 = shalt.err (!%p3563_p11)
}
 0x64c   :  { %2586 = dma.vmem_to_hbm [thread:$0]  %s2584_s18, 128, %s3782_s11, [#allocation4]  }
 0x64d   :  { %3583 = dma.done.wait [#allocation4], 128  }
 0x64e   :  { %3584 = vsyncadd [#allocation4], 4294967168 }
 0x64f   :  { %2590 = vsyncpa [#allocation3], 1 }
 0x650   :  { %2591 = vsyncpa [#allocation6], 1 }
 0x651   :  { %2592 = vsyncpa [#allocation9], 1 }
 0x652   :  { %2593 = vsyncpa [#allocation12], 1 }
 0x653   :  { %2594 = vsyncpa [#allocation4], 1 }

</bundles_post_ra>
